<compile_context>
chip_gen: v7x
topology: tpu7x:2x2x1
jax: 0.10.0
libtpu: 0.0.40
codegen_flags: <defaults>
</compile_context>

<pallas_src>
import functools

import jax
import jax.numpy as jnp
from jax.experimental import pallas as pl
from jax.experimental.pallas import tpu as pltpu

TOPIC_DIM = 5
HIDDEN_DIM = 32      # module default is 256; small synthetic size
BERT_DIM = 768       # hard-coded in the PyTorch module (Linear(768, hidden))
VOCAB = 128
SEQ = 64
BATCH = 16
LANE = 128           # lane-dense padding for side features / final output


def _vmem_limit_bytes():
    """Per-chip VMEM budget: ~3/4 of physical capacity, capped at 96 MiB."""
    cap = 64 * 1024 * 1024
    try:
        info = pltpu.get_tpu_info()
        cap = int(getattr(info, "vmem_capacity_bytes", cap))
    except Exception:
        pass
    return int(min(cap * 3 // 4, 96 * 1024 * 1024))


def _choose_batch_tile(B):
    """Multiple of 8 when possible; keep >= 2 batch blocks for v7x megacore."""
    if B % 8 == 0 and B >= 16:
        return 8
    return B


def _choose_seq_tile(S, tb, Dm, budget_bytes):
    """Largest ts <= min(S, 512), multiple of 16 (bf16 sublane pairs), dividing
    S, whose double-buffered bf16 hidden block (2*tb*ts*Dm*2B) fits budget."""
    if S % 16 != 0:
        return S
    cap = max(16, budget_bytes // (2 * tb * Dm * 2))
    best = 16
    for cand in range(16, min(S, 512) + 1, 16):
        if S % cand == 0 and cand <= cap:
            best = cand
    return best


def _multimodal_kernel(h_ref, side_ref, sel_ref,
                       wp_ref, bp_ref, wtext_ref, wside_ref, b1_ref,
                       w2_ref, b2_ref,
                       out_ref, acc_ref, *, seq_len):
    """Mean-pool accumulate over sequence tiles; proj/MLP/sigmoid on the last."""
    si = pl.program_id(1)

    @pl.when(si == 0)
    def _():
        acc_ref[...] = jnp.zeros_like(acc_ref)

    # Sequence sum of this (tb, ts, 768) bf16 tile on the MXU: a resident
    # block-diagonal ones "selection" matrix contracts the tb*ts rows per
    # batch element with f32 accumulation.  Keeps the VPU / vld slots free for
    # the HBM stream (the MXU is otherwise idle in the steady state) and
    # avoids materialising a full f32 copy of the tile.
    tb, ts, dm = h_ref.shape
    h2d = h_ref[...].reshape(tb * ts, dm)                     # free: leading-dim collapse
    acc_ref[...] += jnp.dot(sel_ref[...], h2d,
                            preferred_element_type=jnp.float32)

    @pl.when(si == pl.num_programs(1) - 1)
    def _():
        # bert_output[0].mean(dim=1)
        pooled = acc_ref[...] * (1.0 / seq_len)               # (tb, 768) f32

        # text_proj: Linear(768, hidden)
        text = jnp.dot(pooled, wp_ref[...],
                       preferred_element_type=jnp.float32) + bp_ref[...]

        # fusion[0]: Linear(hidden + 1 + topic_dim, hidden) applied to
        # cat([text, emotion, topic], dim=1).  The weight is split host-side
        # into the text rows and a lane-padded (128, hidden) block matching the
        # packed [emotion | topic | 0...] side input — mathematically identical
        # to the concat, with no masked sub-lane slicing in the epilogue.
        h1 = (jnp.dot(text, wtext_ref[...], preferred_element_type=jnp.float32)
              + jnp.dot(side_ref[...], wside_ref[...],
                        preferred_element_type=jnp.float32)
              + b1_ref[...])

        # fusion[1]: ReLU ; fusion[2]: Dropout(0.3) is identity at inference.
        h1 = jnp.maximum(h1, 0.0)

        # fusion[3]: Linear(hidden, 1), lane-padded to N=128 so the store is a
        # dense vst (valid result is column 0); then sigmoid.
        logits = jnp.dot(h1, w2_ref[...],
                         preferred_element_type=jnp.float32) + b2_ref[...]
        out_ref[...] = jax.nn.sigmoid(logits)


def multimodal_forward(hidden_states, emotion, topic, params):
    """hidden_states: (B, S, 768) — BERT last_hidden_state (prefer bf16)."""
    B, S, Dm = hidden_states.shape
    H = params["w_proj"].shape[1]

    if hidden_states.dtype != jnp.bfloat16:
        # Upstream (the encoder stub) emits bf16 directly; this cast is only a
        # fallback so the dominant tensor is not re-streamed by a separate op.
        hidden_states = hidden_states.astype(jnp.bfloat16)

    tb = _choose_batch_tile(B)
    vmem_limit = _vmem_limit_bytes()
    ts = _choose_seq_tile(S, tb, Dm, budget_bytes=max(vmem_limit // 3, 8 << 20))

    assert B % tb == 0 and S % ts == 0
    assert (tb % 8 == 0) or (tb == B)
    assert (ts % 16 == 0) or (ts == S)

    emotion = emotion.astype(jnp.float32).reshape(B, 1)
    topic = topic.astype(jnp.float32)
    tdim = topic.shape[1]

    # Side features packed lane-dense: [emotion | topic | 0...] -> (B, 128).
    side = jnp.zeros((B, LANE), jnp.float32)
    side = side.at[:, 0:1].set(emotion).at[:, 1:1 + tdim].set(topic)

    # fusion[0] weight split per feature group (identical to the concat).
    w_f1 = params["w_f1"].astype(jnp.float32)
    w_text = w_f1[:H, :]
    w_side = jnp.zeros((LANE, H), jnp.float32).at[:1 + tdim, :].set(w_f1[H:, :])

    # fusion[3] Linear(hidden, 1) lane-padded (dense store, column 0 valid).
    w2_pad = jnp.zeros((H, LANE), jnp.float32).at[:, 0:1].set(params["w_f2"])
    b2_pad = jnp.zeros((1, LANE), jnp.float32).at[:, 0:1].set(params["b_f2"])

    # Block-diagonal ones selection matrix: pooling-by-matmul on the MXU.
    sel = (jnp.arange(tb)[:, None] ==
           (jnp.arange(tb * ts)[None, :] // ts)).astype(jnp.bfloat16)

    const = lambda bi, si: (0, 0)   # weights resident in VMEM, DMA'd once

    out = pl.pallas_call(
        functools.partial(_multimodal_kernel, seq_len=S),
        out_shape=jax.ShapeDtypeStruct((B, LANE), jnp.float32),
        grid_spec=pltpu.PrefetchScalarGridSpec(
            num_scalar_prefetch=0,
            grid=(B // tb, S // ts),
            in_specs=[
                pl.BlockSpec((tb, ts, Dm), lambda bi, si: (bi, si, 0)),
                pl.BlockSpec((tb, LANE), lambda bi, si: (bi, 0)),
                pl.BlockSpec((tb, tb * ts), const),
                pl.BlockSpec((Dm, H), const),
                pl.BlockSpec((1, H), const),
                pl.BlockSpec((H, H), const),
                pl.BlockSpec((LANE, H), const),
                pl.BlockSpec((1, H), const),
                pl.BlockSpec((H, LANE), const),
                pl.BlockSpec((1, LANE), const),
            ],
            out_specs=pl.BlockSpec((tb, LANE), lambda bi, si: (bi, 0)),
            scratch_shapes=[pltpu.VMEM((tb, Dm), jnp.float32)],
        ),
        compiler_params=pltpu.CompilerParams(
            dimension_semantics=("parallel", "arbitrary"),
            vmem_limit_bytes=vmem_limit,
        ),
    )(hidden_states, side, sel,
      params["w_proj"], params["b_proj"],
      w_text, w_side, params["b_f1"],
      w2_pad, b2_pad)

    # .squeeze() on (B, 1) -> (B,): take the valid lane of the padded output.
    return out[:, 0]


def init_params(key):
    ks = jax.random.split(key, 7)
    fused_in = HIDDEN_DIM + 1 + TOPIC_DIM
    return {
        # Synthetic BERT token-embedding table (stands in for the encoder);
        # stored in bf16 so the lookup emits bf16 hidden states directly.
        "emb": (0.02 * jax.random.normal(ks[0], (VOCAB, BERT_DIM),
                                         jnp.float32)).astype(jnp.bfloat16),
        # text_proj: Linear(768, hidden)
        "w_proj": 0.02 * jax.random.normal(ks[1], (BERT_DIM, HIDDEN_DIM), jnp.float32),
        "b_proj": 0.01 * jax.random.normal(ks[2], (1, HIDDEN_DIM), jnp.float32),
        # fusion[0]: Linear(hidden + 1 + topic_dim, hidden)
        "w_f1": 0.05 * jax.random.normal(ks[3], (fused_in, HIDDEN_DIM), jnp.float32),
        "b_f1": 0.01 * jax.random.normal(ks[4], (1, HIDDEN_DIM), jnp.float32),
        # fusion[3]: Linear(hidden, 1)
        "w_f2": 0.05 * jax.random.normal(ks[5], (HIDDEN_DIM, 1), jnp.float32),
        "b_f2": 0.01 * jax.random.normal(ks[6], (1, 1), jnp.float32),
    }


def _reference(hidden_states, emotion, topic, params):
    """Pure-JAX reference of the post-BERT forward (same bf16 hidden states)."""
    h = hidden_states.astype(jnp.float32)
    pooled = jnp.mean(h, axis=1)
    text = pooled @ params["w_proj"] + params["b_proj"]
    fused = jnp.concatenate(
        [text, emotion.astype(jnp.float32), topic.astype(jnp.float32)], axis=1)
    h1 = jnp.maximum(fused @ params["w_f1"] + params["b_f1"], 0.0)
    logits = h1 @ params["w_f2"] + params["b_f2"]
    return jax.nn.sigmoid(logits)[:, 0]


if __name__ == "__main__":
    key = jax.random.PRNGKey(0)
    k_param, k_ids, k_emo, k_top = jax.random.split(key, 4)

    params = init_params(k_param)

    input_ids = jax.random.randint(k_ids, (BATCH, SEQ), 0, VOCAB, jnp.int32)
    # unused: the module mean-pools bert_output[0] without masking
    attention_mask = jnp.ones((BATCH, SEQ), jnp.int32)
    emotion = jax.random.normal(k_emo, (BATCH, 1), jnp.float32)
    topic = jax.random.normal(k_top, (BATCH, TOPIC_DIM), jnp.float32)

    # BERT stub: bf16 embedding lookup producing the (B, S, 768) hidden states.
    hidden_states = jnp.take(params["emb"], input_ids, axis=0)

    probs = multimodal_forward(hidden_states, emotion, topic, params)
    jax.block_until_ready(probs)

    assert probs.shape == (BATCH,)
    assert bool(jnp.all((probs >= 0.0) & (probs <= 1.0)))

    ref = _reference(hidden_states, emotion, topic, params)
    assert bool(jnp.max(jnp.abs(probs - ref)) < 2e-3), "mismatch vs reference"

    print("KERNEL_OK")
</pallas_src>

<mosaic_0001>
module attributes {stable_mosaic.version = 11 : i64} {
  func.func @_multimodal_kernel(%arg0: i32, %arg1: i32, %arg2: memref<8x64x768xbf16, #tpu.memory_space<vmem>>, %arg3: memref<8x128xf32, #tpu.memory_space<vmem>>, %arg4: memref<8x512xbf16, #tpu.memory_space<vmem>>, %arg5: memref<768x32xf32, #tpu.memory_space<vmem>>, %arg6: memref<1x32xf32, #tpu.memory_space<vmem>>, %arg7: memref<32x32xf32, #tpu.memory_space<vmem>>, %arg8: memref<128x32xf32, #tpu.memory_space<vmem>>, %arg9: memref<1x32xf32, #tpu.memory_space<vmem>>, %arg10: memref<32x128xf32, #tpu.memory_space<vmem>>, %arg11: memref<1x128xf32, #tpu.memory_space<vmem>>, %arg12: memref<8x128xf32, #tpu.memory_space<vmem>>, %arg13: memref<8x768xf32, #tpu.memory_space<vmem>>) attributes {dimension_semantics = [#tpu.dimension_semantics<parallel>, #tpu.dimension_semantics<arbitrary>], iteration_bounds = array<i64: 2, 1>, scalar_prefetch = 0 : i64, scratch_operands = 1 : i64, tpu.core_type = #tpu.core_type<tc>, window_params = [{transform_indices = @transform_0, window_bounds = array<i64: 8, 64, 768>}, {transform_indices = @transform_1, window_bounds = array<i64: 8, 128>}, {pipeline_mode = #tpu.pipeline_mode<synchronous>, transform_indices = @transform_2, window_bounds = array<i64: 8, 512>}, {pipeline_mode = #tpu.pipeline_mode<synchronous>, transform_indices = @transform_3, window_bounds = array<i64: 768, 32>}, {pipeline_mode = #tpu.pipeline_mode<synchronous>, transform_indices = @transform_4, window_bounds = array<i64: 1, 32>}, {pipeline_mode = #tpu.pipeline_mode<synchronous>, transform_indices = @transform_5, window_bounds = array<i64: 32, 32>}, {pipeline_mode = #tpu.pipeline_mode<synchronous>, transform_indices = @transform_6, window_bounds = array<i64: 128, 32>}, {pipeline_mode = #tpu.pipeline_mode<synchronous>, transform_indices = @transform_7, window_bounds = array<i64: 1, 32>}, {pipeline_mode = #tpu.pipeline_mode<synchronous>, transform_indices = @transform_8, window_bounds = array<i64: 32, 128>}, {pipeline_mode = #tpu.pipeline_mode<synchronous>, transform_indices = @transform_9, window_bounds = array<i64: 1, 128>}, {transform_indices = @transform_10, window_bounds = array<i64: 8, 128>}]} {
    %c0_i32 = arith.constant 0 : i32
    %0 = arith.cmpi eq, %arg1, %c0_i32 : i32
    %1 = arith.extui %0 : i1 to i32
    %c0_i32_0 = arith.constant 0 : i32
    %2 = arith.cmpi ne, %1, %c0_i32_0 : i32
    scf.if %2 {
      %cst_11 = arith.constant 0.000000e+00 : f32
      %13 = vector.broadcast %cst_11 : f32 to vector<8x768xf32>
      %c0_12 = arith.constant 0 : index
      %c0_13 = arith.constant 0 : index
      %14 = vector.load %arg13[%c0_12, %c0_13] : memref<8x768xf32, #tpu.memory_space<vmem>>, vector<8x768xf32>
      tpu.vector_store %arg13[%c0_12, %c0_13], %13 {strides = array<i32>} : memref<8x768xf32, #tpu.memory_space<vmem>>, vector<8x768xf32>,
    } else {
    }
    %c0 = arith.constant 0 : index
    %c0_1 = arith.constant 0 : index
    %c0_2 = arith.constant 0 : index
    %3 = vector.load %arg2[%c0, %c0_1, %c0_2] : memref<8x64x768xbf16, #tpu.memory_space<vmem>>, vector<8x64x768xbf16>
    %4 = vector.shape_cast %3 : vector<8x64x768xbf16> to vector<512x768xbf16>
    %c0_3 = arith.constant 0 : index
    %c0_4 = arith.constant 0 : index
    %5 = vector.load %arg13[%c0_3, %c0_4] : memref<8x768xf32, #tpu.memory_space<vmem>>, vector<8x768xf32>
    %c0_5 = arith.constant 0 : index
    %c0_6 = arith.constant 0 : index
    %6 = vector.load %arg4[%c0_5, %c0_6] : memref<8x512xbf16, #tpu.memory_space<vmem>>, vector<8x512xbf16>
    %cst = arith.constant dense<0.000000e+00> : vector<8x768xf32>
    %7 = tpu.matmul %6, %4, %cst {dimension_numbers = #tpu.dot_dimension_numbers<[1], [0], [0], [1], [0, 0, 1, 1], [], []>} : vector<8x512xbf16>, vector<512x768xbf16>, vector<8x768xf32> -> vector<8x768xf32>
    %8 = arith.addf %5, %7 : vector<8x768xf32>
    %c0_7 = arith.constant 0 : index
    %c0_8 = arith.constant 0 : index
    %9 = vector.load %arg13[%c0_7, %c0_8] : memref<8x768xf32, #tpu.memory_space<vmem>>, vector<8x768xf32>
    tpu.vector_store %arg13[%c0_7, %c0_8], %8 {strides = array<i32>} : memref<8x768xf32, #tpu.memory_space<vmem>>, vector<8x768xf32>,
    %c0_i32_9 = arith.constant 0 : i32
    %10 = arith.cmpi eq, %arg1, %c0_i32_9 : i32
    %11 = arith.extui %10 : i1 to i32
    %c0_i32_10 = arith.constant 0 : i32
    %12 = arith.cmpi ne, %11, %c0_i32_10 : i32
    scf.if %12 {
      %c0_11 = arith.constant 0 : index
      %c0_12 = arith.constant 0 : index
      %13 = vector.load %arg13[%c0_11, %c0_12] : memref<8x768xf32, #tpu.memory_space<vmem>>, vector<8x768xf32>
      %cst_13 = arith.constant 1.562500e-02 : f32
      %14 = vector.broadcast %cst_13 : f32 to vector<8x768xf32>
      %15 = arith.mulf %13, %14 : vector<8x768xf32>
      %c0_14 = arith.constant 0 : index
      %c0_15 = arith.constant 0 : index
      %16 = vector.load %arg5[%c0_14, %c0_15] : memref<768x32xf32, #tpu.memory_space<vmem>>, vector<768x32xf32>
      %cst_16 = arith.constant dense<0.000000e+00> : vector<8x32xf32>
      %17 = tpu.matmul %15, %16, %cst_16 {dimension_numbers = #tpu.dot_dimension_numbers<[1], [0], [0], [1], [0, 0, 1, 1], [], []>} : vector<8x768xf32>, vector<768x32xf32>, vector<8x32xf32> -> vector<8x32xf32>
      %c0_17 = arith.constant 0 : index
      %c0_18 = arith.constant 0 : index
      %18 = vector.load %arg6[%c0_17, %c0_18] : memref<1x32xf32, #tpu.memory_space<vmem>>, vector<1x32xf32>
      %19 = vector.broadcast %18 : vector<1x32xf32> to vector<8x32xf32>
      %20 = arith.addf %17, %19 : vector<8x32xf32>
      %c0_19 = arith.constant 0 : index
      %c0_20 = arith.constant 0 : index
      %21 = vector.load %arg7[%c0_19, %c0_20] : memref<32x32xf32, #tpu.memory_space<vmem>>, vector<32x32xf32>
      %cst_21 = arith.constant dense<0.000000e+00> : vector<8x32xf32>
      %22 = tpu.matmul %20, %21, %cst_21 {dimension_numbers = #tpu.dot_dimension_numbers<[1], [0], [0], [1], [0, 0, 1, 1], [], []>} : vector<8x32xf32>, vector<32x32xf32>, vector<8x32xf32> -> vector<8x32xf32>
      %c0_22 = arith.constant 0 : index
      %c0_23 = arith.constant 0 : index
      %23 = vector.load %arg3[%c0_22, %c0_23] : memref<8x128xf32, #tpu.memory_space<vmem>>, vector<8x128xf32>
      %c0_24 = arith.constant 0 : index
      %c0_25 = arith.constant 0 : index
      %24 = vector.load %arg8[%c0_24, %c0_25] : memref<128x32xf32, #tpu.memory_space<vmem>>, vector<128x32xf32>
      %cst_26 = arith.constant dense<0.000000e+00> : vector<8x32xf32>
      %25 = tpu.matmul %23, %24, %cst_26 {dimension_numbers = #tpu.dot_dimension_numbers<[1], [0], [0], [1], [0, 0, 1, 1], [], []>} : vector<8x128xf32>, vector<128x32xf32>, vector<8x32xf32> -> vector<8x32xf32>
      %26 = arith.addf %22, %25 : vector<8x32xf32>
      %c0_27 = arith.constant 0 : index
      %c0_28 = arith.constant 0 : index
      %27 = vector.load %arg9[%c0_27, %c0_28] : memref<1x32xf32, #tpu.memory_space<vmem>>, vector<1x32xf32>
      %28 = vector.broadcast %27 : vector<1x32xf32> to vector<8x32xf32>
      %29 = arith.addf %26, %28 : vector<8x32xf32>
      %cst_29 = arith.constant 0.000000e+00 : f32
      %30 = vector.broadcast %cst_29 : f32 to vector<8x32xf32>
      %31 = arith.maximumf %29, %30 : vector<8x32xf32>
      %c0_30 = arith.constant 0 : index
      %c0_31 = arith.constant 0 : index
      %32 = vector.load %arg10[%c0_30, %c0_31] : memref<32x128xf32, #tpu.memory_space<vmem>>, vector<32x128xf32>
      %cst_32 = arith.constant dense<0.000000e+00> : vector<8x128xf32>
      %33 = tpu.matmul %31, %32, %cst_32 {dimension_numbers = #tpu.dot_dimension_numbers<[1], [0], [0], [1], [0, 0, 1, 1], [], []>} : vector<8x32xf32>, vector<32x128xf32>, vector<8x128xf32> -> vector<8x128xf32>
      %c0_33 = arith.constant 0 : index
      %c0_34 = arith.constant 0 : index
      %34 = vector.load %arg11[%c0_33, %c0_34] : memref<1x128xf32, #tpu.memory_space<vmem>>, vector<1x128xf32>
      %35 = vector.broadcast %34 : vector<1x128xf32> to vector<8x128xf32>
      %36 = arith.addf %33, %35 : vector<8x128xf32>
      %37 = arith.negf %36 : vector<8x128xf32>
      %38 = math.exp %37 : vector<8x128xf32>
      %cst_35 = arith.constant 1.000000e+00 : f32
      %39 = vector.broadcast %cst_35 : f32 to vector<8x128xf32>
      %40 = arith.addf %39, %38 : vector<8x128xf32>
      %41 = arith.divf %39, %40 : vector<8x128xf32>
      %c0_36 = arith.constant 0 : index
      %c0_37 = arith.constant 0 : index
      %42 = vector.load %arg12[%c0_36, %c0_37] : memref<8x128xf32, #tpu.memory_space<vmem>>, vector<8x128xf32>
      tpu.vector_store %arg12[%c0_36, %c0_37], %41 {strides = array<i32>} : memref<8x128xf32, #tpu.memory_space<vmem>>, vector<8x128xf32>,
    } else {
    }
    return
  }
  func.func @transform_0(%arg0: i32, %arg1: i32) -> (i32, i32, i32) {
    %c0_i32 = arith.constant 0 : i32
    %c0_i32_0 = arith.constant 0 : i32
    return %arg0, %arg1, %c0_i32 : i32, i32, i32
  }
  func.func @transform_1(%arg0: i32, %arg1: i32) -> (i32, i32) {
    %c0_i32 = arith.constant 0 : i32
    %c0_i32_0 = arith.constant 0 : i32
    return %arg0, %c0_i32 : i32, i32
  }
  func.func @transform_2(%arg0: i32, %arg1: i32) -> (i32, i32) {
    %c0_i32 = arith.constant 0 : i32
    %c0_i32_0 = arith.constant 0 : i32
    %c0_i32_1 = arith.constant 0 : i32
    return %c0_i32, %c0_i32_0 : i32, i32
  }
  func.func @transform_3(%arg0: i32, %arg1: i32) -> (i32, i32) {
    %c0_i32 = arith.constant 0 : i32
    %c0_i32_0 = arith.constant 0 : i32
    %c0_i32_1 = arith.constant 0 : i32
    return %c0_i32, %c0_i32_0 : i32, i32
  }
  func.func @transform_4(%arg0: i32, %arg1: i32) -> (i32, i32) {
    %c0_i32 = arith.constant 0 : i32
    %c0_i32_0 = arith.constant 0 : i32
    %c0_i32_1 = arith.constant 0 : i32
    return %c0_i32, %c0_i32_0 : i32, i32
  }
  func.func @transform_5(%arg0: i32, %arg1: i32) -> (i32, i32) {
    %c0_i32 = arith.constant 0 : i32
    %c0_i32_0 = arith.constant 0 : i32
    %c0_i32_1 = arith.constant 0 : i32
    return %c0_i32, %c0_i32_0 : i32, i32
  }
  func.func @transform_6(%arg0: i32, %arg1: i32) -> (i32, i32) {
    %c0_i32 = arith.constant 0 : i32
    %c0_i32_0 = arith.constant 0 : i32
    %c0_i32_1 = arith.constant 0 : i32
    return %c0_i32, %c0_i32_0 : i32, i32
  }
  func.func @transform_7(%arg0: i32, %arg1: i32) -> (i32, i32) {
    %c0_i32 = arith.constant 0 : i32
    %c0_i32_0 = arith.constant 0 : i32
    %c0_i32_1 = arith.constant 0 : i32
    return %c0_i32, %c0_i32_0 : i32, i32
  }
  func.func @transform_8(%arg0: i32, %arg1: i32) -> (i32, i32) {
    %c0_i32 = arith.constant 0 : i32
    %c0_i32_0 = arith.constant 0 : i32
    %c0_i32_1 = arith.constant 0 : i32
    return %c0_i32, %c0_i32_0 : i32, i32
  }
  func.func @transform_9(%arg0: i32, %arg1: i32) -> (i32, i32) {
    %c0_i32 = arith.constant 0 : i32
    %c0_i32_0 = arith.constant 0 : i32
    %c0_i32_1 = arith.constant 0 : i32
    return %c0_i32, %c0_i32_0 : i32, i32
  }
  func.func @transform_10(%arg0: i32, %arg1: i32) -> (i32, i32) {
    %c0_i32 = arith.constant 0 : i32
    %c0_i32_0 = arith.constant 0 : i32
    return %arg0, %c0_i32 : i32, i32
  }
}

</mosaic_0001>

<bundles_post_ra>
// kernel: tpu_custom_call.1
= control target key start
LH: loop header
LB: loop body
LE: loop exit
PB: predicated region body
PF: predicated region fallthrough
CT: control target
= control target key end

     0   :  { %s5082_s0 = inlined_call_operand.hbm [shape: bf16[16,64,768], index: 0, kind: input, shape index: {}]   ;;  %s5083_s1 = inlined_call_operand.hbm [shape: f32[16,128], index: 1, kind: input, shape index: {}]   ;;  %s5084_s2 = inlined_call_operand.hbm [shape: bf16[8,512], index: 2, kind: input, shape index: {}]   ;;  %s5085_s3 = inlined_call_operand.vmem [shape: f32[768,32], index: 3, kind: input, shape index: {}]   ;;  %s5086_s4 = inlined_call_operand.hbm [shape: f32[1,32], index: 4, kind: input, shape index: {}]   ;;  %s5087_s5 = inlined_call_operand.hbm [shape: f32[32,32], index: 5, kind: input, shape index: {}]   ;;  %s5088_s6 = inlined_call_operand.vmem [shape: f32[128,32], index: 6, kind: input, shape index: {}]   ;;  %s5089_s7 = inlined_call_operand.hbm [shape: f32[1,32], index: 7, kind: input, shape index: {}]   ;;  %s5090_s8 = inlined_call_operand.hbm [shape: f32[32,128], index: 8, kind: input, shape index: {}]   ;;  %s5091_s9 = inlined_call_operand.hbm [shape: f32[1,128], index: 9, kind: input, shape index: {}]   ;;  %s5092_s10 = inlined_call_operand.hbm [shape: f32[16,128], index: 10, kind: output, shape index: {}]  }
   0x1   :  { %5099 = sst [smem:[#allocation27_spill]] %s5082_s0 }
   0x2   :  { %5100 = sst [smem:[#allocation28_spill]] %s5084_s2 }
   0x3   :  { %5101 = sst [smem:[#allocation29_spill]] %s5086_s4 }
   0x4   :  { %5102 = sst [smem:[#allocation30_spill]] %s5087_s5 }
   0x5   :  { %5103 = sst [smem:[#allocation31_spill]] %s5089_s7 }
   0x6   :  { %5104 = sst [smem:[#allocation32_spill]] %s5090_s8 }
   0x7   :  { %5105 = sst [smem:[#allocation33_spill]] %s5091_s9 }
   0x8   :  { %5106 = sst [smem:[#allocation34_spill]] %s5092_s10 }
   0x9   :  { %15 = vsyncpa [#allocation4], 0 }
   0xa   :  { %17 = vsyncpa [#allocation4 + $0x1], 0 }
   0xb   :  { %18 = vsyncpa [#allocation7], 0 }
   0xc   :  { %20 = vsyncpa [#allocation7 + $0x1], 0 }
   0xd   :  { %21 = vsyncpa [#allocation10], 0 }
   0xe   :  { %22 = vsyncpa [#allocation13], 0 }
   0xf   :  { %23 = vsyncpa [#allocation16], 0 }
  0x10   :  { %24 = vsyncpa [#allocation5], 0 }
  0x11   :  { %26 = vsyncpa [#allocation5 + $0x1], 0  ;;  %s4124_s13 = smov 0   ;;  %s4126_s14 = smov 0  }
  0x12   :  { %s4128_s15 = smov 0   ;;  %s4130_s16 = smov 0  }
  0x13   :  { %s4132_s17 = smov 0   ;;  %s4134_s18 = smov 0  }
  0x14 LB: > { %5107 = sst [smem:[#allocation25_spill]] %s4043_s16  ;;  %s4155_s19 = sadd.s32 4294967295, %s4051_s18   ;;  %s4051_s18 = sphi %s4134_s18, %s32_s18   ;;  %s4047_s17 = sphi %s4132_s17, %s5145_s17   ;;  %s4043_s16 = sphi %s4130_s16, %s5144_s16   ;;  %s4039_s15 = sphi %s4128_s15, %s5143_s15   ;;  %s4035_s14 = sphi %s4126_s14, %s5142_s14   ;;  %s4031_s13 = sphi %s4124_s13, %s5141_s13  }
  0x15   : > { %p2726_p0 = scmp.ge.s32.totalorder %s4051_s18, 1  ;;  %p5093_p1 = scmp.eq.s32.totalorder %s4155_s19, 0 }
  0x16   : > { %p297_p2 = scmp.lt.s32.totalorder %s4051_s18, 3  ;;  %s4053_s21 = smov [#allocation8]  }
  0x17   : > { %s310_s22 = sshll.u32 %s4053_s21, 4  ;;  %s4054_s23 = smov [#allocation9]   ;;  %s311_s22 = int_to_ptr.vmem [resolvable:$true] %s310_s22 }
  0x18   : > { %p4160_p3 = pnand %p2726_p0, %p297_p2  ;;  %s324_s24 = sshll.u32 %s4054_s23, 4  ;;  %s4173_s24 = int_to_ptr.vmem [resolvable:$true] %s324_s24 }
  0x19   : > { %s4055_s26 = smov [#allocation12]   ;;  %s5110_s2 = sld [smem:[#allocation28_spill]] }
  0x1a   : > { %s5108_s20 = scalar_select %p4160_p3, 1, 0 }
  0x1b   : > { %p3320_p5 = pneg %p4160_p3  ;;  %s351_s27 = sshll.u32 %s4055_s26, 4  ;;  %s4175_s27 = int_to_ptr.vmem [resolvable:$true] %s351_s27 }
  0x1d   : > { %p4169_p6 = pnand %p3320_p5, %p5093_p1 }
  0x1f   : > { %s3721_s30 = scalar_lea.hbm %s5110_s2, 256  ;;  %p4185_p8 = pneg %p4169_p6 }
  0x20   : > { %p3722_p7 = scmp.ne.s32.totalorder %s5110_s2, %s3721_s30  ;;  %p3728_p11 = scmp.lt.u32.totalorder %s3721_s30, %s5110_s2 }
  0x22   : > { %p3724_p9 = pnand %p4185_p8, %p3722_p7 }
  0x24   : > { %p3725_p10 = pneg %p3724_p9 }
  0x26   : > { %p3730_p12 = pnand %p3728_p11, %p3725_p10 }
  0x28   : > { %3733 = shalt.err (!%p3730_p12)
}
  0x29   : > { %s3734_s28 = scalar_lea.vmem %s311_s22, 256  ;;  %p3742_p5 = scmp.lt.s32.totalorder %s311_s22, %s311_s22 }
  0x2a   : > { %p3735_p13 = scmp.ne.s32.totalorder %s311_s22, %s3734_s28  ;;  %p3743_p4 = scmp.lt.s32.totalorder %s3734_s28, %s3734_s28 }
  0x2c   : > { %p3737_p0 = pnand %p3735_p13, %p4185_p8  ;;  %p3744_p1 = por %p3743_p4, %p3742_p5 }
  0x2e   : > { %p3738_p2 = pneg %p3737_p0 }
  0x30   : > { %p3745_p3 = pnand %p3744_p1, %p3738_p2 }
  0x32   : > { %3748 = shalt.err (!%p3745_p3)
}
  0x33   : > { %3323 = dma.hbm_to_vmem [thread:$0]  (!%p4169_p6), %s5110_s2, 256, %s311_s22, [#allocation7]  }
  0x34   : > { %s5112_s4 = sld [smem:[#allocation29_spill]] }
  0x3a   : > { %s3749_s23 = scalar_lea.hbm %s5112_s4, 16 }
  0x3b   : > { %p3750_p7 = scmp.ne.s32.totalorder %s5112_s4, %s3749_s23  ;;  %p3756_p1 = scmp.lt.u32.totalorder %s3749_s23, %s5112_s4 }
  0x3d   : > { %p3752_p9 = pnand %p3750_p7, %p4185_p8 }
  0x3f   : > { %p3753_p4 = pneg %p3752_p9 }
  0x41   : > { %p3758_p3 = pnand %p3756_p1, %p3753_p4 }
  0x43   : > { %3761 = shalt.err (!%p3758_p3)
}
  0x44   : > { %s3762_s22 = scalar_lea.vmem %s4173_s24, 16  ;;  %s3769_s10 = scalar_lea.vmem %s4173_s24, 32 }
  0x45   : > { %p3763_p10 = scmp.ne.s32.totalorder %s4173_s24, %s3762_s22  ;;  %p3770_p13 = scmp.lt.s32.totalorder %s4173_s24, %s4173_s24 }
  0x46   : > { %p3771_p0 = scmp.lt.s32.totalorder %s3769_s10, %s3762_s22 }
  0x47   : > { %p3765_p11 = pnand %p3763_p10, %p4185_p8 }
  0x48   : > { %p3772_p2 = por %p3771_p0, %p3770_p13 }
  0x49   : > { %p3766_p12 = pneg %p3765_p11 }
  0x4b   : > { %p3773_p5 = pnand %p3772_p2, %p3766_p12 }
  0x4d   : > { %3776 = shalt.err (!%p3773_p5)
}
  0x4e   : > { %3326 = dma.hbm_to_vmem [thread:$0]  (!%p4169_p6), %s5112_s4, 16, %s4173_s24, [#allocation10]  }
  0x4f   : > { %s5113_s7 = sld [smem:[#allocation31_spill]] }
  0x55   : > { %s3777_s12 = scalar_lea.hbm %s5113_s7, 16 }
  0x56   : > { %p3778_p7 = scmp.ne.s32.totalorder %s5113_s7, %s3777_s12  ;;  %p3784_p1 = scmp.lt.u32.totalorder %s3777_s12, %s5113_s7 }
  0x58   : > { %p3780_p9 = pnand %p3778_p7, %p4185_p8 }
  0x5a   : > { %p3781_p4 = pneg %p3780_p9 }
  0x5c   : > { %p3786_p3 = pnand %p3784_p1, %p3781_p4 }
  0x5e   : > { %3789 = shalt.err (!%p3786_p3)
}
  0x5f   : > { %s3790_s24 = scalar_lea.vmem %s4175_s27, 16  ;;  %s3797_s10 = scalar_lea.vmem %s4175_s27, 32 }
  0x60   : > { %p3791_p10 = scmp.ne.s32.totalorder %s4175_s27, %s3790_s24  ;;  %p3798_p13 = scmp.lt.s32.totalorder %s4175_s27, %s4175_s27 }
  0x61   : > { %p3799_p0 = scmp.lt.s32.totalorder %s3797_s10, %s3790_s24 }
  0x62   : > { %p3793_p11 = pnand %p3791_p10, %p4185_p8 }
  0x63   : > { %p3800_p2 = por %p3799_p0, %p3798_p13 }
  0x64   : > { %p3794_p12 = pneg %p3793_p11 }
  0x66   : > { %p3801_p5 = pnand %p3800_p2, %p3794_p12 }
  0x68   : > { %3804 = shalt.err (!%p3801_p5)
}
  0x69   : > { %3332 = dma.hbm_to_vmem [thread:$0]  (!%p4169_p6), %s5113_s7, 16, %s4175_s27, [#allocation13]  }
  0x6a   : > { %s4056_s11 = smov [#allocation11]   ;;  %s5114_s5 = sld [smem:[#allocation30_spill]] }
  0x6b   : > { %s334_s30 = sshll.u32 %s4056_s11, 4  ;;  %s335_s30 = int_to_ptr.vmem [resolvable:$true] %s334_s30 }
  0x70   : > { %s3805_s26 = scalar_lea.hbm %s5114_s5, 512 }
  0x71   : > { %p3806_p7 = scmp.ne.s32.totalorder %s5114_s5, %s3805_s26  ;;  %p3812_p1 = scmp.lt.u32.totalorder %s3805_s26, %s5114_s5 }
  0x73   : > { %p3808_p9 = pnand %p3806_p7, %p4185_p8 }
  0x75   : > { %p3809_p4 = pneg %p3808_p9 }
  0x77   : > { %p3814_p3 = pnand %p3812_p1, %p3809_p4 }
  0x79   : > { %3817 = shalt.err (!%p3814_p3)
}
  0x7a   : > { %s3818_s27 = scalar_lea.vmem %s335_s30, 512  ;;  %p3826_p13 = scmp.lt.s32.totalorder %s335_s30, %s335_s30 }
  0x7b   : > { %p3819_p10 = scmp.ne.s32.totalorder %s335_s30, %s3818_s27  ;;  %p3827_p0 = scmp.lt.s32.totalorder %s3818_s27, %s3818_s27 }
  0x7d   : > { %p3821_p11 = pnand %p3819_p10, %p4185_p8  ;;  %p3828_p2 = por %p3827_p0, %p3826_p13 }
  0x7f   : > { %p3822_p12 = pneg %p3821_p11 }
  0x81   : > { %p3829_p5 = pnand %p3828_p2, %p3822_p12 }
  0x83   : > { %3832 = shalt.err (!%p3829_p5)
}
  0x84   : > { %s4057_s16 = smov 128   ;;  %s4058_s29 = smov 8  }
  0x85   : > { %3329 = dma.hbm_to_vmem [thread:$0]  (!%p4169_p6), %s5114_s5, 512, %s335_s30, [#allocation10], %s4057_s16, %s4057_s16, %s4058_s29  }
  0x86   : > { %s4059_s23 = smov [#allocation14]   ;;  %s4060_s28 = smov [#allocation15]  }
  0x87   : > { %s361_s26 = sshll.u32 %s4059_s23, 4  ;;  %s375_s22 = sshll.u32 %s4060_s28, 4  ;;  %s362_s26 = int_to_ptr.vmem [resolvable:$true] %s361_s26  ;;  %s4267_s22 = int_to_ptr.vmem [resolvable:$true] %s375_s22 }
  0x88   : > { %s5115_s8 = sld [smem:[#allocation32_spill]] }
  0x8e   : > { %s3833_s27 = scalar_lea.hbm %s5115_s8, 512 }
  0x8f   : > { %p3834_p7 = scmp.ne.s32.totalorder %s5115_s8, %s3833_s27  ;;  %p3840_p1 = scmp.lt.u32.totalorder %s3833_s27, %s5115_s8 }
  0x91   : > { %p3836_p9 = pnand %p3834_p7, %p4185_p8 }
  0x93   : > { %p3837_p4 = pneg %p3836_p9 }
  0x95   : > { %p3842_p3 = pnand %p3840_p1, %p3837_p4 }
  0x97   : > { %3845 = shalt.err (!%p3842_p3)
}
  0x98   : > { %s3846_s12 = scalar_lea.vmem %s362_s26, 512  ;;  %p3854_p13 = scmp.lt.s32.totalorder %s362_s26, %s362_s26 }
  0x99   : > { %p3847_p10 = scmp.ne.s32.totalorder %s362_s26, %s3846_s12  ;;  %p3855_p0 = scmp.lt.s32.totalorder %s3846_s12, %s3846_s12 }
  0x9b   : > { %p3849_p11 = pnand %p3847_p10, %p4185_p8  ;;  %p3856_p2 = por %p3855_p0, %p3854_p13 }
  0x9d   : > { %p3850_p12 = pneg %p3849_p11 }
  0x9f   : > { %p3857_p5 = pnand %p3856_p2, %p3850_p12 }
  0xa1   : > { %3860 = shalt.err (!%p3857_p5)
}
  0xa2   : > { %3335 = dma.hbm_to_vmem [thread:$0]  (!%p4169_p6), %s5115_s8, 512, %s362_s26, [#allocation13], %s4057_s16, %s4057_s16, %s4058_s29  }
  0xa3   : > { %s5116_s9 = sld [smem:[#allocation33_spill]] }
  0xa9   : > { %s3861_s24 = scalar_lea.hbm %s5116_s9, 16 }
  0xaa   : > { %p3862_p7 = scmp.ne.s32.totalorder %s5116_s9, %s3861_s24  ;;  %p3868_p1 = scmp.lt.u32.totalorder %s3861_s24, %s5116_s9 }
  0xac   : > { %p3864_p9 = pnand %p3862_p7, %p4185_p8 }
  0xae   : > { %p3865_p4 = pneg %p3864_p9 }
  0xb0   : > { %p3870_p3 = pnand %p3868_p1, %p3865_p4 }
  0xb2   : > { %3873 = shalt.err (!%p3870_p3)
}
  0xb3   : > { %s3874_s16 = scalar_lea.vmem %s4267_s22, 16  ;;  %s3881_s29 = scalar_lea.vmem %s4267_s22, 32 }
  0xb4   : > { %p3875_p10 = scmp.ne.s32.totalorder %s4267_s22, %s3874_s16  ;;  %p3882_p13 = scmp.lt.s32.totalorder %s4267_s22, %s4267_s22 }
  0xb5   : > { %p3883_p0 = scmp.lt.s32.totalorder %s3881_s29, %s3874_s16 }
  0xb6   : > { %p3877_p11 = pnand %p3875_p10, %p4185_p8 }
  0xb7   : > { %p3884_p2 = por %p3883_p0, %p3882_p13 }
  0xb8   : > { %p3878_p12 = pneg %p3877_p11 }
  0xba   : > { %p3885_p5 = pnand %p3884_p2, %p3878_p12 }
  0xbc   : > { %3888 = shalt.err (!%p3885_p5)
}
  0xbd   : > { %3338 = dma.hbm_to_vmem [thread:$0]  (!%p4169_p6), %s5116_s9, 16, %s4267_s22, [#allocation16]  }
  0xbe   : > { %s2725_s21 = sadd.s32 4294967294, %s4051_s18   ;;  %s44_s2 = sadd.s32 1, %s4047_s17 }
  0xbf   : > { %p46_p8 = scmp.ge.s32.totalorder %s44_s2, 2  ;;  %s53_s25 = sadd.s32 1, %s4039_s15 }
  0xc0   : > { %p60_p7 = scmp.ne.s32.totalorder %s4039_s15, %s4035_s14  ;;  %p61_p9 = scmp.eq.s32.totalorder %s4051_s18, 0 }
  0xc1   : > { %s5147_s2 = smov (%p46_p8, %s44_s2), 0  ;;  %p66_p1 = scmp.ne.s32.totalorder %s4035_s14, %s4031_s13 }
  0xc2   : > { %5117 = sst [smem:[#allocation26_spill]] %s5147_s2  ;;  %p4319_p4 = por %p61_p9, %p60_p7 }
  0xc3   : > { %s48_s22 = ssub.s32 %s4047_s17, %s5147_s2  ;;  %p284_p6 = scmp.eq.s32.totalorder %s4155_s19, 1 }
  0xc4   : > { %p51_p3 = scmp.eq.s32.totalorder %s48_s22, 0  ;;  %p5119_p10 = scmp.eq.s32.totalorder %s4155_s19, 0 }
  0xc5   : > { %p4334_p12 = por %p284_p6, %p60_p7  ;;  %p290_p13 = scmp.eq.s32.totalorder %s2725_s21, 1 }
  0xc6   : > { %p4330_p11 = por %p5119_p10, %p66_p1  ;;  %p3356_p2 = scmp.lt.s32.totalorder %s4051_s18, 2 }
  0xc7   : > { %s5121_s28 = scalar_select %p4334_p12, 1, 0 }
  0xc8   : > { %s5120_s23 = scalar_select %p4330_p11, 1, 0 }
  0xc9   : > { %s4339_s24 = scalar_select %p51_p3, %s4039_s15, %s53_s25  }
  0xca   : > { %p4341_p0 = por %p290_p13, %p66_p1  ;;  %s4347_s27 = sand.u32 1, %s4039_s15  }
  0xcb   : > { %s3288_s11 = smul.u32 24576, %s4047_s17  ;;  %s5123_s0 = sld [smem:[#allocation27_spill]] }
  0xcc   : > { %s5122_s10 = scalar_select %p4341_p0, 1, 0 }
  0xcd   : > { %s3287_s30 = smul.u32 1536, %s4347_s27  ;;  %p4358_p5 = pnand %p3356_p2, %p4319_p4 }
  0xce   : > { %s387_s22 = scalar_lea.sflag [#allocation4], %s4347_s27 }
  0xcf   : > { %s390_s21 = scalar_lea.vmem [#allocation3], %s3287_s30  ;;  %p3891_p7 = pneg %p4358_p5 }
  0xd0   : > { %s401_s25 = sshll.u32 %s390_s21, 4  ;;  %s4362_s25 = int_to_ptr.vmem [resolvable:$true] %s401_s25 }
  0xd1   : > { %s4354_s26 = scalar_lea.hbm %s5123_s0, %s3288_s11  ;;  %s3894_s16 = scalar_lea.hbm %s5123_s0, 49152 }
  0xd2   : > { %s3889_s5 = scalar_lea.hbm %s4354_s26, 24576  ;;  %p3895_p4 = scmp.lt.u32.totalorder %s4354_s26, %s5123_s0 }
  0xd3   : > { %p3890_p8 = scmp.ne.s32.totalorder %s4354_s26, %s3889_s5  ;;  %p3896_p6 = scmp.lt.u32.totalorder %s3894_s16, %s3889_s5 }
  0xd4   : > { %p3898_p10 = scmp.lt.u32.totalorder %s3889_s5, %s4354_s26 }
  0xd5   : > { %p3892_p9 = pnand %p3891_p7, %p3890_p8  ;;  %p3897_p3 = por %p3896_p6, %p3895_p4 }
  0xd7   : > { %p3893_p1 = pneg %p3892_p9  ;;  %p3899_p13 = por %p3898_p10, %p3897_p3 }
  0xd9   : > { %p3900_p2 = pnand %p3899_p13, %p3893_p1 }
  0xdb   : > { %3903 = shalt.err (!%p3900_p2)
}
  0xdc   : > { %s3904_s30 = scalar_lea.vmem %s4362_s25, 24576  ;;  %s4061_s21 = smov [#allocation3]  }
  0xdd   : > { %p3905_p8 = scmp.ne.s32.totalorder %s4362_s25, %s3904_s30  ;;  %s3909_s4 = sshll.u32 %s4061_s21, 4  ;;  %s3910_s4 = int_to_ptr.vmem [resolvable:$false] %s3909_s4 }
  0xde   : > { %s3911_s7 = scalar_lea.vmem %s3910_s4, 49152  ;;  %p3912_p12 = scmp.lt.s32.totalorder %s4362_s25, %s3910_s4 }
  0xdf   : > { %p3907_p9 = pnand %p3905_p8, %p3891_p7  ;;  %p3913_p4 = scmp.lt.s32.totalorder %s3911_s7, %s3904_s30 }
  0xe1   : > { %p3908_p0 = pneg %p3907_p9  ;;  %p3914_p6 = por %p3913_p4, %p3912_p12 }
  0xe3   : > { %p3915_p3 = pnand %p3914_p6, %p3908_p0 }
  0xe5   : > { %3918 = shalt.err (!%p3915_p3)
}
  0xe6   : > { %s4062_s5 = smov 384   ;;  %s4063_s11 = smov 24  }
  0xe7   : > { %3342 = dma.hbm_to_vmem [thread:$0]  (!%p4358_p5), %s4354_s26, 24576, %s4362_s25, %s387_s22, %s4062_s5, %s4062_s5, %s4063_s11  }
  0xe8   : > { %s411_s16 = sand.u32 1, %s4051_s18   ;;  %s2737_s29 = sshll.u32 %s4347_s27, 3 }
  0xe9   : > { %s2738_s21 = sshll.u32 %s4047_s17, 7  ;;  %s415_s30 = scalar_lea.vmem [#allocation6], %s2737_s29 }
  0xea   : > { %s422_s4 = sshll.u32 %s415_s30, 4  ;;  %s4398_s8 = scalar_lea.hbm %s5083_s1, %s2738_s21  ;;  %s423_s4 = int_to_ptr.vmem [resolvable:$true] %s422_s4 }
  0xeb   : > { %s412_s9 = scalar_lea.sflag [#allocation7], %s411_s16  ;;  %s3919_s2 = scalar_lea.hbm %s4398_s8, 128 }
  0xec   : > { %p3920_p12 = scmp.ne.s32.totalorder %s4398_s8, %s3919_s2  ;;  %s3924_s25 = scalar_lea.hbm %s5083_s1, 256 }
  0xed   : > { %p3925_p10 = scmp.lt.u32.totalorder %s4398_s8, %s5083_s1  ;;  %p3926_p13 = scmp.lt.u32.totalorder %s3924_s25, %s3919_s2 }
  0xee   : > { %p3922_p0 = pnand %p3920_p12, %p3891_p7  ;;  %p3928_p8 = scmp.lt.u32.totalorder %s3919_s2, %s4398_s8 }
  0xef   : > { %p3927_p2 = por %p3926_p13, %p3925_p10 }
  0xf0   : > { %p3923_p1 = pneg %p3922_p0 }
  0xf1   : > { %p3929_p9 = por %p3928_p8, %p3927_p2 }
  0xf3   : > { %p3930_p4 = pnand %p3929_p9, %p3923_p1 }
  0xf5   : > { %3933 = shalt.err (!%p3930_p4)
}
  0xf6   : > { %s3934_s5 = scalar_lea.vmem %s423_s4, 128  ;;  %s4064_s11 = smov [#allocation6]  }
  0xf7   : > { %p3935_p6 = scmp.ne.s32.totalorder %s423_s4, %s3934_s5  ;;  %s3939_s16 = sshll.u32 %s4064_s11, 4  ;;  %s3940_s16 = int_to_ptr.vmem [resolvable:$false] %s3939_s16 }
  0xf8   : > { %s3941_s29 = scalar_lea.vmem %s3940_s16, 256  ;;  %p3942_p0 = scmp.lt.s32.totalorder %s423_s4, %s3940_s16 }
  0xf9   : > { %p3937_p3 = pnand %p3935_p6, %p3891_p7  ;;  %p3943_p11 = scmp.lt.s32.totalorder %s3941_s29, %s3934_s5 }
  0xfb   : > { %p3938_p12 = pneg %p3937_p3  ;;  %p3944_p10 = por %p3943_p11, %p3942_p0 }
  0xfd   : > { %p3945_p13 = pnand %p3944_p10, %p3938_p12 }
  0xff   : > { %3948 = shalt.err (!%p3945_p13)
}
 0x100   : > { %3345 = dma.hbm_to_vmem [thread:$0]  (!%p4358_p5), %s4398_s8, 128, %s423_s4, %s412_s9  }
 0x101   : > { %p5125_p1 = scmp.ne.s32.totalorder %s5108_s20, 0 }
 0x102   : > { %s4422_s2 = sand.u32 (!%p5125_p1), 1, %s4035_s14   ;;  %p5126_p11 = scmp.ne.s32.totalorder (!%p5125_p1), %s5120_s23, 0 }
 0x103   : > { %431 = sbr.rel (%p5125_p1) target bundleno = 1444 (0x5a4), region = 60  ;;  %s434_s30 = scalar_lea.sflag (!%p5125_p1), [#allocation4], %s4422_s2 }
 0x104   : > { %s3289_s21 = smul.u32 (!%p5125_p1), 1536, %s4422_s2 }
 0x106   : > { %s4426_s7 = scalar_lea.vmem (!%p5125_p1), [#allocation3], %s3289_s21 }
 0x10a   : > { %4002 = dma.done.wait (%p5126_p11), %s434_s30, 24576  }
 0x10b   : > { %4004 = vsyncadd (%p5126_p11), %s434_s30, 4294942720  ;;  %s442_s8 = sand.u32 1, %s4155_s19   ;;  %s2740_s9 = sshll.u32 %s4422_s2, 3 }
 0x10c   : > { %s443_s20 = scalar_lea.sflag [#allocation7], %s442_s8  ;;  %s4436_s12 = scalar_lea.vmem [#allocation6], %s2740_s9 }
 0x10d   : > { %4006 = dma.done.wait (%p5126_p11), %s443_s20, 128  }
 0x10e   : > { %4008 = vsyncadd (%p5126_p11), %s443_s20, 4294967168  ;;  %p5127_p5 = scmp.eq.s32.totalorder %s4155_s19, 0 }
 0x110   : > { %4010 = dma.done.wait (%p5127_p5), [#allocation7], 256   ;;  %p5128_p7 = pmov %p5127_p5 }
 0x111   : > { %p5129_p2 = pmov %p5127_p5 }
 0x112   : > { %4012 = vsyncadd (%p5128_p7), [#allocation7], 4294967040 }
 0x113   : > { %4014 = dma.done.wait (%p5129_p2), [#allocation10], 528   ;;  %p5130_p8 = pmov %p5129_p2 }
 0x114   : > { %p5131_p9 = pmov %p5129_p2 }
 0x115   : > { %4016 = vsyncadd (%p5130_p8), [#allocation10], 4294966768 }
 0x116   : > { %4018 = dma.done.wait (%p5131_p9), [#allocation13], 528   ;;  %p5132_p4 = pmov %p5129_p2 }
 0x117   : > { %p5133_p6 = pmov %p5129_p2 }
 0x118   : > { %4020 = vsyncadd (%p5132_p4), [#allocation13], 4294966768 }
 0x119   : > { %4022 = dma.done.wait (%p5133_p6), [#allocation16], 16   ;;  %p5134_p3 = pmov %p5129_p2 }
 0x11a   : > { %v3425_v0 = vld [vmem:[%s4426_s7 + $0x4] ss:$24 sps:$4 sm:$0xff]   ;;  %v3427_v1 = vld [vmem:[%s4426_s7] ss:$24 sps:$4 sm:$0xff]   ;;  %v3428_v2 = vld [vmem:[%s4426_s7 + $0x34] ss:$24 sps:$4 sm:$0xff]  }
 0x11b   : > { %4024 = vsyncadd (%p5134_p3), [#allocation16], 4294967280  ;;  %1698 = vmatprep.subr.bf16.mxu0 %v3425_v0  ;;  %v3430_v3 = vld [vmem:[%s4426_s7 + $0x30] ss:$24 sps:$4 sm:$0xff]   ;;  %v3431_v4 = vld [vmem:[%s4426_s7 + $0x64] ss:$24 sps:$4 sm:$0xff]  }
 0x11c   : > { %1699 = vmatpush1.bf16.msra.mxu0 %v3427_v1  ;;  %v3433_v5 = vld [vmem:[%s4426_s7 + $0x60] ss:$24 sps:$4 sm:$0xff]   ;;  %v3434_v6 = vld [vmem:[%s4426_s7 + $0x94] ss:$24 sps:$4 sm:$0xff]   ;;  %v3436_v7 = vld [vmem:[%s4426_s7 + $0x90] ss:$24 sps:$4 sm:$0xff]  }
 0x11d   : > { %1700 = vmatprep.subr.bf16.mxu0 %v3428_v2  ;;  %v3449_v8 = vld [vmem:[%s4426_s7 + $0xc] ss:$24 sps:$4 sm:$0xff]   ;;  %v3453_v10 = vld [vmem:[%s4426_s7 + $0x8] ss:$24 sps:$4 sm:$0xff]   ;;  %v3455_v11 = vld [vmem:[%s4426_s7 + $0x3c] ss:$24 sps:$4 sm:$0xff]  }
 0x11e   : > { %v3437_v9 = vld [vmem:[%s4426_s7 + $0xc4] ss:$24 sps:$4 sm:$0xff]   ;;  %1780 = vmatprep.subr.bf16.mxu1 %v3449_v8  ;;  %v3439_v12 = vld [vmem:[%s4426_s7 + $0xc0] ss:$24 sps:$4 sm:$0xff]   ;;  %v3440_v13 = vld [vmem:[%s4426_s7 + $0xf4] ss:$24 sps:$4 sm:$0xff]  }
 0x11f   : > { %1781 = vmatpush1.bf16.msra.mxu1 %v3453_v10  ;;  %v3459_v14 = vld [vmem:[%s4426_s7 + $0x38] ss:$24 sps:$4 sm:$0xff]   ;;  %v3461_v15 = vld [vmem:[%s4426_s7 + $0x6c] ss:$24 sps:$4 sm:$0xff]   ;;  %v3465_v17 = vld [vmem:[%s4426_s7 + $0x68] ss:$24 sps:$4 sm:$0xff]  }
 0x120   : > { %1701 = vmatpush1.bf16.msra.mxu0 %v3430_v3  ;;  %1782 = vmatprep.subr.bf16.mxu1 %v3455_v11  ;;  %v3442_v16 = vld [vmem:[%s4426_s7 + $0xf0] ss:$24 sps:$4 sm:$0xff]   ;;  %v3467_v18 = vld [vmem:[%s4426_s7 + $0x9c] ss:$24 sps:$4 sm:$0xff]   ;;  %v3445_v21 = vld [vmem:[%s4426_s7 + $0x120] ss:$24 sps:$4 sm:$0xff]  }
 0x121   : > { %1702 = vmatprep.subr.bf16.mxu0 %v3431_v4  ;;  %v3443_v19 = vld [vmem:[%s4426_s7 + $0x124] ss:$24 sps:$4 sm:$0xff]   ;;  %v3471_v20 = vld [vmem:[%s4426_s7 + $0x98] ss:$24 sps:$4 sm:$0xff]   ;;  %v3446_v23 = vld [vmem:[%s4426_s7 + $0x154] ss:$24 sps:$4 sm:$0xff]  }
 0x122   : > { %v3473_v22 = vld [vmem:[%s4426_s7 + $0xcc] ss:$24 sps:$4 sm:$0xff]   ;;  %v3448_v24 = vld [vmem:[%s4426_s7 + $0x150] ss:$24 sps:$4 sm:$0xff]   ;;  %v3479_v26 = vld [vmem:[%s4426_s7 + $0xfc] ss:$24 sps:$4 sm:$0xff]  }
 0x123   : > { %1783 = vmatpush1.bf16.msra.mxu1 %v3459_v14  ;;  %v3477_v25 = vld [vmem:[%s4426_s7 + $0xc8] ss:$24 sps:$4 sm:$0xff]   ;;  %v3451_v27 = vld [vmem:[%s4426_s7 + $0x184] ss:$24 sps:$4 sm:$0xff]   ;;  %v3483_v28 = vld [vmem:[%s4426_s7 + $0xf8] ss:$24 sps:$4 sm:$0xff]  }
 0x124   : > { %1703 = vmatpush1.bf16.msra.mxu0 %v3433_v5  ;;  %1784 = vmatprep.subr.bf16.mxu1 %v3461_v15  ;;  %v3454_v29 = vld [vmem:[%s4426_s7 + $0x180] ss:$24 sps:$4 sm:$0xff]   ;;  %v3485_v30 = vld [vmem:[%s4426_s7 + $0x12c] ss:$24 sps:$4 sm:$0xff]   ;;  %v722_v32 = vld [vmem:[#allocation8] sm:$0xff]  ;;  %vm4066_vm0 = vmmov 0  }
 0x125   : > { %1704 = vmatprep.subr.bf16.mxu0 %v3434_v6  ;;  %v3457_v31 = vld [vmem:[%s4426_s7 + $0x1b4] ss:$24 sps:$4 sm:$0xff]   ;;  %v3460_v33 = vld [vmem:[%s4426_s7 + $0x1b0] ss:$24 sps:$4 sm:$0xff]   ;;  %v4492_v35 = vcombine.high %v722_v32, %v722_v32  ;;  %v3463_v37 = vld [vmem:[%s4426_s7 + $0x1e4] ss:$24 sps:$4 sm:$0xff]   ;;  %v4523_v63 = vcombine.low %v722_v32, %v722_v32 }
 0x126   : > { %v3489_v34 = vld [vmem:[%s4426_s7 + $0x128] ss:$24 sps:$4 sm:$0xff]   ;;  %v3491_v36 = vld [vmem:[%s4426_s7 + $0x15c] ss:$24 sps:$4 sm:$0xff]   ;;  %v3495_v38 = vld [vmem:[%s4426_s7 + $0x158] ss:$24 sps:$4 sm:$0xff]  }
 0x127   : > { %1785 = vmatpush1.bf16.msra.mxu1 %v3465_v17  ;;  %1730 = vmatprep.mubr.bf16.mxu0 %v4492_v35  ;;  %v3466_v39 = vld [vmem:[%s4426_s7 + $0x1e0] ss:$24 sps:$4 sm:$0xff]   ;;  %v3497_v40 = vld [vmem:[%s4426_s7 + $0x18c] ss:$24 sps:$4 sm:$0xff]   ;;  %v3472_v42 = vld [vmem:[%s4426_s7 + $0x210] ss:$24 sps:$4 sm:$0xff]  }
 0x128   : > { %1705 = vmatpush1.bf16.msra.mxu0 %v3436_v7  ;;  %1786 = vmatprep.subr.bf16.mxu1 %v3467_v18  ;;  %v3469_v41 = vld [vmem:[%s4426_s7 + $0x214] ss:$24 sps:$4 sm:$0xff]   ;;  %v3503_v43 = vld [vmem:[%s4426_s7 + $0x188] ss:$24 sps:$4 sm:$0xff]   ;;  %v3475_v45 = vld [vmem:[%s4426_s7 + $0x244] ss:$24 sps:$4 sm:$0xff]  }
 0x129   : > { %1706 = vmatprep.subr.bf16.mxu0 %v3437_v9  ;;  %1812 = vmatprep.mubr.bf16.mxu1 %v4492_v35  ;;  %v3505_v44 = vld [vmem:[%s4426_s7 + $0x1bc] ss:$24 sps:$4 sm:$0xff]   ;;  %v3510_v46 = vld [vmem:[%s4426_s7 + $0x1b8] ss:$24 sps:$4 sm:$0xff]   ;;  %v3511_v48 = vld [vmem:[%s4426_s7 + $0x1ec] ss:$24 sps:$4 sm:$0xff]  }
 0x12a   : > { %v3478_v47 = vld [vmem:[%s4426_s7 + $0x240] ss:$24 sps:$4 sm:$0xff]   ;;  %v3481_v49 = vld [vmem:[%s4426_s7 + $0x274] ss:$24 sps:$4 sm:$0xff]   ;;  %v3484_v50 = vld [vmem:[%s4426_s7 + $0x270] ss:$24 sps:$4 sm:$0xff]  }
 0x12b   : > { %1787 = vmatpush1.bf16.msra.mxu1 %v3471_v20  ;;  %v3516_v51 = vld [vmem:[%s4426_s7 + $0x1e8] ss:$24 sps:$4 sm:$0xff]   ;;  %v3517_v52 = vld [vmem:[%s4426_s7 + $0x21c] ss:$24 sps:$4 sm:$0xff]   ;;  %v3522_v55 = vld [vmem:[%s4426_s7 + $0x218] ss:$24 sps:$4 sm:$0xff]  }
 0x12c   : > { %1707 = vmatpush1.bf16.msra.mxu0 %v3439_v12  ;;  %1788 = vmatprep.subr.bf16.mxu1 %v3473_v22  ;;  %v3487_v53 = vld [vmem:[%s4426_s7 + $0x2a4] ss:$24 sps:$4 sm:$0xff]   ;;  %v3490_v54 = vld [vmem:[%s4426_s7 + $0x2a0] ss:$24 sps:$4 sm:$0xff]   ;;  %v3493_v57 = vld [vmem:[%s4426_s7 + $0x2d4] ss:$24 sps:$4 sm:$0xff]  }
 0x12d   : > { %1708 = vmatprep.subr.bf16.mxu0 %v3440_v13  ;;  %v3523_v56 = vld [vmem:[%s4426_s7 + $0x24c] ss:$24 sps:$4 sm:$0xff]   ;;  %v3496_v58 = vld [vmem:[%s4426_s7 + $0x2d0] ss:$24 sps:$4 sm:$0xff]   ;;  %v3529_v60 = vld [vmem:[%s4426_s7 + $0x27c] ss:$24 sps:$4 sm:$0xff]  }
 0x12e   : > { %v3528_v59 = vld [vmem:[%s4426_s7 + $0x248] ss:$24 sps:$4 sm:$0xff]   ;;  %v3502_v61 = vld [vmem:[%s4426_s7 + $0x304] ss:$24 sps:$4 sm:$0xff]   ;;  %v3534_v0 = vld [vmem:[%s4426_s7 + $0x278] ss:$24 sps:$4 sm:$0xff]  }
 0x12f   : > { %1789 = vmatpush1.bf16.msra.mxu1 %v3477_v25  ;;  %v3500_v62 = vld [vmem:[%s4426_s7 + $0x300] ss:$24 sps:$4 sm:$0xff]   ;;  %v3535_v1 = vld [vmem:[%s4426_s7 + $0x2ac] ss:$24 sps:$4 sm:$0xff]   ;;  %v3507_v3 = vld [vmem:[%s4426_s7 + $0x330] ss:$24 sps:$4 sm:$0xff]  }
 0x130   : > { %1709 = vmatpush1.bf16.msra.mxu0 %v3442_v16  ;;  %1790 = vmatprep.subr.bf16.mxu1 %v3479_v26  ;;  %v3509_v2 = vld [vmem:[%s4426_s7 + $0x334] ss:$24 sps:$4 sm:$0xff]   ;;  %v3540_v4 = vld [vmem:[%s4426_s7 + $0x2a8] ss:$24 sps:$4 sm:$0xff]   ;;  %v3515_v6 = vld [vmem:[%s4426_s7 + $0x364] ss:$24 sps:$4 sm:$0xff]  }
 0x131   : > { %1710 = vmatprep.subr.bf16.mxu0 %v3443_v19  ;;  %v3541_v5 = vld [vmem:[%s4426_s7 + $0x2dc] ss:$24 sps:$4 sm:$0xff]   ;;  %v3513_v7 = vld [vmem:[%s4426_s7 + $0x360] ss:$24 sps:$4 sm:$0xff]   ;;  %v3549_v9 = vld [vmem:[%s4426_s7 + $0x30c] ss:$24 sps:$4 sm:$0xff]  }
 0x132   : > { %v3546_v8 = vld [vmem:[%s4426_s7 + $0x2d8] ss:$24 sps:$4 sm:$0xff]   ;;  %v3521_v10 = vld [vmem:[%s4426_s7 + $0x394] ss:$24 sps:$4 sm:$0xff]   ;;  %v3547_v12 = vld [vmem:[%s4426_s7 + $0x308] ss:$24 sps:$4 sm:$0xff]  }
 0x133   : > { %1791 = vmatpush1.bf16.msra.mxu1 %v3483_v28  ;;  %v3519_v11 = vld [vmem:[%s4426_s7 + $0x390] ss:$24 sps:$4 sm:$0xff]   ;;  %v3555_v13 = vld [vmem:[%s4426_s7 + $0x33c] ss:$24 sps:$4 sm:$0xff]   ;;  %v3525_v17 = vld [vmem:[%s4426_s7 + $0x3c0] ss:$24 sps:$4 sm:$0xff]  }
 0x134   : > { %1711 = vmatpush1.bf16.msra.mxu0 %v3445_v21  ;;  %1792 = vmatprep.subr.bf16.mxu1 %v3485_v30  ;;  %v4540_v14 = vld [vmem:[#allocation8 + $0x8] sm:$0xff]  ;;  %v3561_v19 = vld [vmem:[%s4426_s7 + $0x36c] ss:$24 sps:$4 sm:$0xff]   ;;  %v3531_v21 = vld [vmem:[%s4426_s7 + $0x3f0] ss:$24 sps:$4 sm:$0xff]   ;;  %vm2375_vm1 = vcmask 261120  }
 0x135   : > { %1712 = vmatprep.subr.bf16.mxu0 %v3446_v23  ;;  %v3527_v15 = vld [vmem:[%s4426_s7 + $0x3c4] ss:$24 sps:$4 sm:$0xff]   ;;  %v4545_v16 = vcombine.high %v4540_v14, %v4540_v14  ;;  %v3553_v18 = vld [vmem:[%s4426_s7 + $0x338] ss:$24 sps:$4 sm:$0xff]   ;;  %v3533_v20 = vld [vmem:[%s4426_s7 + $0x3f4] ss:$24 sps:$4 sm:$0xff]  }
 0x136   : > { %v3559_v22 = vld [vmem:[%s4426_s7 + $0x368] ss:$24 sps:$4 sm:$0xff]   ;;  %v3567_v23 = vld [vmem:[%s4426_s7 + $0x39c] ss:$24 sps:$4 sm:$0xff]   ;;  %v3565_v26 = vld [vmem:[%s4426_s7 + $0x398] ss:$24 sps:$4 sm:$0xff]  }
 0x137   : > { %1793 = vmatpush1.bf16.msra.mxu1 %v3489_v34  ;;  %v3537_v25 = vld [vmem:[%s4426_s7 + $0x420] ss:$24 sps:$4 sm:$0xff]   ;;  %v3545_v28 = vld [vmem:[%s4426_s7 + $0x454] ss:$24 sps:$4 sm:$0xff]   ;;  %v3552_v32 = vld [vmem:[%s4426_s7 + $0x484] ss:$24 sps:$4 sm:$0xff]  }
 0x138   : > { %1713 = vmatpush1.bf16.msra.mxu0 %v3448_v24  ;;  %1794 = vmatprep.subr.bf16.mxu1 %v3491_v36  ;;  %v3539_v24 = vld [vmem:[%s4426_s7 + $0x424] ss:$24 sps:$4 sm:$0xff]   ;;  %v3571_v30 = vld [vmem:[%s4426_s7 + $0x3c8] ss:$24 sps:$4 sm:$0xff]   ;;  %v3577_v34 = vld [vmem:[%s4426_s7 + $0x3f8] ss:$24 sps:$4 sm:$0xff]  }
 0x139   : > { %1714 = vmatprep.subr.bf16.mxu0 %v3451_v27  ;;  %v3573_v27 = vld [vmem:[%s4426_s7 + $0x3cc] ss:$24 sps:$4 sm:$0xff]   ;;  %s511_s5 = scalar_lea.vmem [#allocation17], %s2740_s9  ;;  %s2550_s30 = scalar_lea.sflag [#allocation5], %s4422_s2 }
 0x13a   : > { %v3585_v36 = vld [vmem:[%s4426_s7 + $0x42c] ss:$24 sps:$4 sm:$0xff]   ;;  %s2563_s11 = sshll.u32 %s511_s5, 4  ;;  %p5137_p0 = scmp.ne.s32.totalorder %s5121_s28, 0  ;;  %s5035_s11 = int_to_ptr.vmem [resolvable:$true] %s2563_s11 }
 0x13b   : > { %1795 = vmatpush1.bf16.msra.mxu1 %v3495_v38  ;;  %v3556_v38 = vld [vmem:[%s4426_s7 + $0x4b0] ss:$24 sps:$4 sm:$0xff]   ;;  %s3949_s8 = scalar_lea.vmem %s5035_s11, 128  ;;  %s4068_s9 = smov [#allocation17]  }
 0x13c   : > { %1715 = vmatpush1.bf16.msra.mxu0 %v3454_v29  ;;  %1796 = vmatprep.subr.bf16.mxu1 %v3497_v40  ;;  %v3543_v29 = vld [vmem:[%s4426_s7 + $0x450] ss:$24 sps:$4 sm:$0xff]   ;;  %v3591_v40 = vld [vmem:[%s4426_s7 + $0x45c] ss:$24 sps:$4 sm:$0xff]   ;;  %p3950_p12 = scmp.ne.s32.totalorder %s5035_s11, %s3949_s8  ;;  %s3953_s20 = sshll.u32 %s4068_s9, 4  ;;  %s3954_s20 = int_to_ptr.vmem [resolvable:$false] %s3953_s20 }
 0x13d   : > { %1716 = vmatprep.subr.bf16.mxu0 %v3457_v31  ;;  %v3579_v31 = vld [vmem:[%s4426_s7 + $0x3fc] ss:$24 sps:$4 sm:$0xff]   ;;  %s3955_s19 = scalar_lea.vmem %s3954_s20, 256  ;;  %p3956_p1 = scmp.lt.s32.totalorder %s5035_s11, %s3954_s20 }
 0x13e   : > { %p3951_p10 = pnand %p3950_p12, %p5137_p0  ;;  %p3957_p11 = scmp.lt.s32.totalorder %s3955_s19, %s3949_s8 }
 0x13f   : > { %1797 = vmatpush1.bf16.msra.mxu1 %v3503_v43  ;;  %v3589_v43 = vld [vmem:[%s4426_s7 + $0x458] ss:$24 sps:$4 sm:$0xff]  }
 0x140   : > { %1717 = vmatpush1.bf16.msra.mxu0 %v3460_v33  ;;  %1798 = vmatprep.subr.bf16.mxu1 %v3505_v44  ;;  %v3550_v33 = vld [vmem:[%s4426_s7 + $0x480] ss:$24 sps:$4 sm:$0xff]   ;;  %v3599_v44 = vld [vmem:[%s4426_s7 + $0x48c] ss:$24 sps:$4 sm:$0xff]   ;;  %p3952_p13 = pneg %p3951_p10  ;;  %p3958_p5 = por %p3957_p11, %p3956_p1 }
 0x141   : > { %1718 = vmatprep.subr.bf16.mxu0 %v3463_v37  ;;  %v3558_v37 = vld [vmem:[%s4426_s7 + $0x4b4] ss:$24 sps:$4 sm:$0xff]  }
 0x142   : > { %p3959_p7 = pnand %p3958_p5, %p3952_p13 }
 0x143   : > { %1799 = vmatpush1.bf16.msra.mxu1 %v3510_v46  ;;  %v3568_v46 = vld [vmem:[%s4426_s7 + $0x510] ss:$24 sps:$4 sm:$0xff]  }
 0x144   : > { %1719 = vmatpush1.bf16.msra.mxu0 %v3466_v39  ;;  %1800 = vmatprep.subr.bf16.mxu1 %v3511_v48  ;;  %v3583_v39 = vld [vmem:[%s4426_s7 + $0x428] ss:$24 sps:$4 sm:$0xff]   ;;  %v3605_v48 = vld [vmem:[%s4426_s7 + $0x4bc] ss:$24 sps:$4 sm:$0xff]  }
 0x145   : > { %1720 = vmatprep.subr.bf16.mxu0 %v3469_v41  ;;  %v3564_v41 = vld [vmem:[%s4426_s7 + $0x4e4] ss:$24 sps:$4 sm:$0xff]  }
 0x147   : > { %1801 = vmatpush1.bf16.msra.mxu1 %v3516_v51  ;;  %v3603_v51 = vld [vmem:[%s4426_s7 + $0x4b8] ss:$24 sps:$4 sm:$0xff]  }
 0x148   : > { %1721 = vmatpush1.bf16.msra.mxu0 %v3472_v42  ;;  %1802 = vmatprep.subr.bf16.mxu1 %v3517_v52  ;;  %v3562_v42 = vld [vmem:[%s4426_s7 + $0x4e0] ss:$24 sps:$4 sm:$0xff]   ;;  %v3611_v52 = vld [vmem:[%s4426_s7 + $0x4ec] ss:$24 sps:$4 sm:$0xff]  }
 0x149   : > { %1722 = vmatprep.subr.bf16.mxu0 %v3475_v45  ;;  %v3570_v45 = vld [vmem:[%s4426_s7 + $0x514] ss:$24 sps:$4 sm:$0xff]  }
 0x14b   : > { %1803 = vmatpush1.bf16.msra.mxu1 %v3522_v55  ;;  %v3609_v55 = vld [vmem:[%s4426_s7 + $0x4e8] ss:$24 sps:$4 sm:$0xff]  }
 0x14c   : > { %1723 = vmatpush1.bf16.msra.mxu0 %v3478_v47  ;;  %1804 = vmatprep.subr.bf16.mxu1 %v3523_v56  ;;  %v3597_v47 = vld [vmem:[%s4426_s7 + $0x488] ss:$24 sps:$4 sm:$0xff]   ;;  %v3617_v56 = vld [vmem:[%s4426_s7 + $0x51c] ss:$24 sps:$4 sm:$0xff]  }
 0x14d   : > { %1724 = vmatprep.subr.bf16.mxu0 %v3481_v49  ;;  %v3576_v49 = vld [vmem:[%s4426_s7 + $0x544] ss:$24 sps:$4 sm:$0xff]  }
 0x14f   : > { %1805 = vmatpush1.bf16.msra.mxu1 %v3528_v59  ;;  %v3615_v59 = vld [vmem:[%s4426_s7 + $0x518] ss:$24 sps:$4 sm:$0xff]  }
 0x150   : > { %1725 = vmatpush1.bf16.msra.mxu0 %v3484_v50  ;;  %1806 = vmatprep.subr.bf16.mxu1 %v3529_v60  ;;  %v3574_v50 = vld [vmem:[%s4426_s7 + $0x540] ss:$24 sps:$4 sm:$0xff]   ;;  %v3623_v60 = vld [vmem:[%s4426_s7 + $0x54c] ss:$24 sps:$4 sm:$0xff]  }
 0x151   : > { %1726 = vmatprep.subr.bf16.mxu0 %v3487_v53  ;;  %v3582_v53 = vld [vmem:[%s4426_s7 + $0x574] ss:$24 sps:$4 sm:$0xff]  }
 0x153   : > { %1807 = vmatpush1.bf16.msra.mxu1 %v3534_v0  ;;  %v3621_v0 = vld [vmem:[%s4426_s7 + $0x548] ss:$24 sps:$4 sm:$0xff]  }
 0x154   : > { %1727 = vmatpush1.bf16.msra.mxu0 %v3490_v54  ;;  %1808 = vmatprep.subr.bf16.mxu1 %v3535_v1  ;;  %v3580_v54 = vld [vmem:[%s4426_s7 + $0x570] ss:$24 sps:$4 sm:$0xff]   ;;  %v3629_v1 = vld [vmem:[%s4426_s7 + $0x57c] ss:$24 sps:$4 sm:$0xff]  }
 0x155   : > { %1728 = vmatprep.subr.bf16.mxu0 %v3493_v57  ;;  %v3588_v57 = vld [vmem:[%s4426_s7 + $0x5a4] ss:$24 sps:$4 sm:$0xff]  }
 0x157   : > { %1809 = vmatpush1.bf16.msra.mxu1 %v3540_v4  ;;  %v4601_v4 = vcombine.low %v4540_v14, %v4540_v14  ;;  %v3639_v14 = vld [vmem:[%s4426_s7 + $0x5d8] ss:$24 sps:$4 sm:$0xff]  }
 0x158   : > { %1729 = vmatpush1.bf16.msra.mxu0 %v3496_v58  ;;  %1810 = vmatprep.subr.bf16.mxu1 %v3541_v5  ;;  %v3586_v58 = vld [vmem:[%s4426_s7 + $0x5a0] ss:$24 sps:$4 sm:$0xff]  }
 0x159   : > { %1739 = vmatprep.subr.bf16.mxu0 %v3502_v61  ;;  %v3594_v61 = vld [vmem:[%s4426_s7 + $0x5d4] ss:$24 sps:$4 sm:$0xff]   ;;  %v3627_v5 = vld [vmem:[%s4426_s7 + $0x578] ss:$24 sps:$4 sm:$0xff]  }
 0x15b   : > { %1731 = vmatmul.mubr.bf16.vlgmr.msra.gmra.mrb[0].mxu0 %v4523_v63  ;;  %1811 = vmatpush1.bf16.msra.mxu1 %v3546_v8  ;;  %v3633_v8 = vld [vmem:[%s4426_s7 + $0x5a8] ss:$24 sps:$4 sm:$0xff]  }
 0x15c   : > { %1740 = vmatpush1.bf16.msra.mxu0 %v3500_v62  ;;  %1821 = vmatprep.subr.bf16.mxu1 %v3549_v9  ;;  %v3592_v62 = vld [vmem:[%s4426_s7 + $0x5d0] ss:$24 sps:$4 sm:$0xff]   ;;  %v3606_v9 = vld [vmem:[%s4426_s7 + $0x40] ss:$24 sps:$4 sm:$0xff]  }
 0x15d   : > { %1741 = vmatprep.subr.bf16.mxu0 %v3509_v2  ;;  %1771 = vmatprep.mubr.bf16.mxu0 %v4545_v16  ;;  %v3602_v2 = vld [vmem:[%s4426_s7 + $0x14] ss:$24 sps:$4 sm:$0xff]  }
 0x15e   : > { %1813 = vmatmul.mubr.bf16.vlgmr.msra.gmra.mrb[0].mxu1 %v4523_v63 }
 0x15f   : > { %1822 = vmatpush1.bf16.msra.mxu1 %v3547_v12  ;;  %1853 = vmatprep.mubr.bf16.mxu1 %v4545_v16  ;;  %v1987_v12 = vld [vmem:[%s5085_s3 + $0x80] sm:$0xff] }
 0x160   : > { %1742 = vmatpush1.bf16.msra.mxu0 %v3507_v3  ;;  %1823 = vmatprep.subr.bf16.mxu1 %v3555_v13  ;;  %v3600_v3 = vld [vmem:[%s4426_s7 + $0x10] ss:$24 sps:$4 sm:$0xff]  }
 0x161   : > { %1743 = vmatprep.subr.bf16.mxu0 %v3515_v6  ;;  %v3635_v6 = vld [vmem:[%s4426_s7 + $0x5ac] ss:$24 sps:$4 sm:$0xff]  }
 0x162   : > { %v1988_v13 = vld [vmem:[%s5085_s3 + $0x88] sm:$0xff] }
 0x163   : > { %1824 = vmatpush1.bf16.msra.mxu1 %v3553_v18  ;;  %v1972_v18 = vld [vmem:[%s5085_s3 + $0x8] sm:$0xff] }
 0x164   : > { %1744 = vmatpush1.bf16.msra.mxu0 %v3513_v7  ;;  %1825 = vmatprep.subr.bf16.mxu1 %v3561_v19  ;;  %v3608_v7 = vld [vmem:[%s4426_s7 + $0x44] ss:$24 sps:$4 sm:$0xff]  }
 0x165   : > { %1745 = vmatprep.subr.bf16.mxu0 %v3521_v10  ;;  %v3641_v10 = vld [vmem:[%s4426_s7 + $0x5dc] ss:$24 sps:$4 sm:$0xff]  }
 0x166   : > { %v3620_v19 = vld [vmem:[%s4426_s7 + $0xa4] ss:$24 sps:$4 sm:$0xff]  }
 0x167   : > { %1826 = vmatpush1.bf16.msra.mxu1 %v3559_v22 }
 0x168   : > { %1746 = vmatpush1.bf16.msra.mxu0 %v3519_v11  ;;  %1827 = vmatprep.subr.bf16.mxu1 %v3567_v23  ;;  %v3614_v11 = vld [vmem:[%s4426_s7 + $0x74] ss:$24 sps:$4 sm:$0xff]   ;;  %v3618_v23 = vld [vmem:[%s4426_s7 + $0xa0] ss:$24 sps:$4 sm:$0xff]  }
 0x169   : > { %1747 = vmatprep.subr.bf16.mxu0 %v3527_v15  ;;  %v3612_v15 = vld [vmem:[%s4426_s7 + $0x70] ss:$24 sps:$4 sm:$0xff]  }
 0x16b   : > { %1828 = vmatpush1.bf16.msra.mxu1 %v3565_v26  ;;  %v1974_v26 = vld [vmem:[%s5085_s3 + $0x18] sm:$0xff] }
 0x16c   : > { %1748 = vmatpush1.bf16.msra.mxu0 %v3525_v17  ;;  %1829 = vmatprep.subr.bf16.mxu1 %v3573_v27  ;;  %v3143_v17 = vpack.c.bf16 %v1988_v13, %v1987_v12  ;;  %v3626_v27 = vld [vmem:[%s4426_s7 + $0xd4] ss:$24 sps:$4 sm:$0xff]   ;;  %v3654_v12 = vld [vmem:[%s4426_s7 + $0x220] ss:$24 sps:$4 sm:$0xff]  }
 0x16d   : > { %1749 = vmatprep.subr.bf16.mxu0 %v3533_v20  ;;  %v1989_v20 = vld [vmem:[%s5085_s3 + $0x90] sm:$0xff] }
 0x16e   : > { %v3659_v13 = vld [vmem:[%s4426_s7 + $0x254] ss:$24 sps:$4 sm:$0xff]  }
 0x16f   : > { %1830 = vmatpush1.bf16.msra.mxu1 %v3571_v30 }
 0x170   : > { %1750 = vmatpush1.bf16.msra.mxu0 %v3531_v21  ;;  %1831 = vmatprep.subr.bf16.mxu1 %v3579_v31  ;;  %v1990_v21 = vld [vmem:[%s5085_s3 + $0x98] sm:$0xff]  ;;  %v3624_v31 = vld [vmem:[%s4426_s7 + $0xd0] ss:$24 sps:$4 sm:$0xff]  }
 0x171   : > { %1751 = vmatprep.subr.bf16.mxu0 %v3539_v24  ;;  %v3147_v24 = vpack.c.bf16 %v1990_v21, %v1989_v20  ;;  %v3666_v20 = vld [vmem:[%s4426_s7 + $0x2e0] ss:$24 sps:$4 sm:$0xff]   ;;  %v3671_v21 = vld [vmem:[%s4426_s7 + $0x314] ss:$24 sps:$4 sm:$0xff]  }
 0x173   : > { %1832 = vmatpush1.bf16.msra.mxu1 %v3577_v34  ;;  %v1976_v34 = vld [vmem:[%s5085_s3 + $0x28] sm:$0xff] }
 0x174   : > { %1752 = vmatpush1.bf16.msra.mxu0 %v3537_v25  ;;  %1833 = vmatprep.subr.bf16.mxu1 %v3585_v36  ;;  %v1973_v25 = vld [vmem:[%s5085_s3 + $0x10] sm:$0xff]  ;;  %v3632_v36 = vld [vmem:[%s4426_s7 + $0x104] ss:$24 sps:$4 sm:$0xff]  }
 0x175   : > { %1753 = vmatprep.subr.bf16.mxu0 %v3545_v28  ;;  %v1991_v28 = vld [vmem:[%s5085_s3 + $0xa0] sm:$0xff]  ;;  %v3149_v30 = vpack.c.bf16 %v1974_v26, %v1973_v25  ;;  %v3677_v25 = vld [vmem:[%s4426_s7 + $0x374] ss:$24 sps:$4 sm:$0xff]   ;;  %v3675_v26 = vld [vmem:[%s4426_s7 + $0x370] ss:$24 sps:$4 sm:$0xff]  }
 0x177   : > { %1834 = vmatpush1.bf16.msra.mxu1 %v3583_v39 }
 0x178   : > { %1754 = vmatpush1.bf16.msra.mxu0 %v3543_v29  ;;  %1835 = vmatprep.subr.bf16.mxu1 %v3591_v40  ;;  %v1992_v29 = vld [vmem:[%s5085_s3 + $0xa8] sm:$0xff]  ;;  %v3630_v40 = vld [vmem:[%s4426_s7 + $0x100] ss:$24 sps:$4 sm:$0xff]  }
 0x179   : > { %1755 = vmatprep.subr.bf16.mxu0 %v3552_v32  ;;  %v3151_v32 = vpack.c.bf16 %v1992_v29, %v1991_v28  ;;  %v3678_v28 = vld [vmem:[%s4426_s7 + $0x3a0] ss:$24 sps:$4 sm:$0xff]   ;;  %v3683_v29 = vld [vmem:[%s4426_s7 + $0x3d4] ss:$24 sps:$4 sm:$0xff]  }
 0x17b   : > { %1836 = vmatpush1.bf16.msra.mxu1 %v3589_v43  ;;  %v1978_v43 = vld [vmem:[%s5085_s3 + $0x38] sm:$0xff] }
 0x17c   : > { %1756 = vmatpush1.bf16.msra.mxu0 %v3550_v33  ;;  %1837 = vmatprep.subr.bf16.mxu1 %v3599_v44  ;;  %v1975_v33 = vld [vmem:[%s5085_s3 + $0x20] sm:$0xff]  ;;  %v3638_v44 = vld [vmem:[%s4426_s7 + $0x134] ss:$24 sps:$4 sm:$0xff]  }
 0x17d   : > { %1757 = vmatprep.subr.bf16.mxu0 %v3558_v37  ;;  %v1993_v37 = vld [vmem:[%s5085_s3 + $0xb0] sm:$0xff]  ;;  %v3153_v39 = vpack.c.bf16 %v1976_v34, %v1975_v33 }
 0x17e   : > { %v1985_v34 = vld [vmem:[%s5085_s3 + $0x70] sm:$0xff] }
 0x17f   : > { %1838 = vmatpush1.bf16.msra.mxu1 %v3597_v47 }
 0x180   : > { %1758 = vmatpush1.bf16.msra.mxu0 %v3556_v38  ;;  %1839 = vmatprep.subr.bf16.mxu1 %v3605_v48  ;;  %v1994_v38 = vld [vmem:[%s5085_s3 + $0xb8] sm:$0xff]  ;;  %v3636_v48 = vld [vmem:[%s4426_s7 + $0x130] ss:$24 sps:$4 sm:$0xff]  }
 0x181   : > { %1759 = vmatprep.subr.bf16.mxu0 %v3564_v41  ;;  %v3155_v41 = vpack.c.bf16 %v1994_v38, %v1993_v37  ;;  %v3689_v37 = vld [vmem:[%s4426_s7 + $0x434] ss:$24 sps:$4 sm:$0xff]  }
 0x183   : > { %1840 = vmatpush1.bf16.msra.mxu1 %v3603_v51  ;;  %v1980_v51 = vld [vmem:[%s5085_s3 + $0x48] sm:$0xff] }
 0x184   : > { %1760 = vmatpush1.bf16.msra.mxu0 %v3562_v42  ;;  %1841 = vmatprep.subr.bf16.mxu1 %v3611_v52  ;;  %v1977_v42 = vld [vmem:[%s5085_s3 + $0x30] sm:$0xff]  ;;  %v3644_v52 = vld [vmem:[%s4426_s7 + $0x164] ss:$24 sps:$4 sm:$0xff]  }
 0x185   : > { %1761 = vmatprep.subr.bf16.mxu0 %v3570_v45  ;;  %v1995_v45 = vld [vmem:[%s5085_s3 + $0xc0] sm:$0xff]  ;;  %v3157_v47 = vpack.c.bf16 %v1978_v43, %v1977_v42 }
 0x186   : > { %v3692_v43 = vld [vmem:[%s4426_s7 + $0x464] ss:$24 sps:$4 sm:$0xff]  }
 0x187   : > { %1842 = vmatpush1.bf16.msra.mxu1 %v3609_v55 }
 0x188   : > { %1762 = vmatpush1.bf16.msra.mxu0 %v3568_v46  ;;  %1843 = vmatprep.subr.bf16.mxu1 %v3617_v56  ;;  %v1996_v46 = vld [vmem:[%s5085_s3 + $0xc8] sm:$0xff]  ;;  %v3642_v56 = vld [vmem:[%s4426_s7 + $0x160] ss:$24 sps:$4 sm:$0xff]  }
 0x189   : > { %1763 = vmatprep.subr.bf16.mxu0 %v3576_v49  ;;  %v3159_v49 = vpack.c.bf16 %v1996_v46, %v1995_v45  ;;  %v3695_v45 = vld [vmem:[%s4426_s7 + $0x494] ss:$24 sps:$4 sm:$0xff]   ;;  %v3693_v46 = vld [vmem:[%s4426_s7 + $0x490] ss:$24 sps:$4 sm:$0xff]  }
 0x18b   : > { %1844 = vmatpush1.bf16.msra.mxu1 %v3615_v59  ;;  %v1982_v59 = vld [vmem:[%s5085_s3 + $0x58] sm:$0xff] }
 0x18c   : > { %1764 = vmatpush1.bf16.msra.mxu0 %v3574_v50  ;;  %1845 = vmatprep.subr.bf16.mxu1 %v3623_v60  ;;  %v1979_v50 = vld [vmem:[%s5085_s3 + $0x40] sm:$0xff]  ;;  %v3647_v60 = vld [vmem:[%s4426_s7 + $0x194] ss:$24 sps:$4 sm:$0xff]  }
 0x18d   : > { %1765 = vmatprep.subr.bf16.mxu0 %v3582_v53  ;;  %v1997_v53 = vld [vmem:[%s5085_s3 + $0xd0] sm:$0xff]  ;;  %v3161_v55 = vpack.c.bf16 %v1980_v51, %v1979_v50  ;;  %v3704_v51 = vld [vmem:[%s4426_s7 + $0x524] ss:$24 sps:$4 sm:$0xff]  }
 0x18e   : > { %v3699_v50 = vld [vmem:[%s4426_s7 + $0x4f0] ss:$24 sps:$4 sm:$0xff]  }
 0x18f   : > { %1846 = vmatpush1.bf16.msra.mxu1 %v3621_v0 }
 0x190   : > { %1766 = vmatpush1.bf16.msra.mxu0 %v3580_v54  ;;  %1847 = vmatprep.subr.bf16.mxu1 %v3629_v1  ;;  %v1998_v54 = vld [vmem:[%s5085_s3 + $0xd8] sm:$0xff]  ;;  %v3645_v1 = vld [vmem:[%s4426_s7 + $0x190] ss:$24 sps:$4 sm:$0xff]  }
 0x191   : > { %1767 = vmatprep.subr.bf16.mxu0 %v3588_v57  ;;  %v3163_v57 = vpack.c.bf16 %v1998_v54, %v1997_v53  ;;  %v3707_v53 = vld [vmem:[%s4426_s7 + $0x554] ss:$24 sps:$4 sm:$0xff]   ;;  %v3705_v54 = vld [vmem:[%s4426_s7 + $0x550] ss:$24 sps:$4 sm:$0xff]  }
 0x193   : > { %1848 = vmatpush1.bf16.msra.mxu1 %v3627_v5  ;;  %v1984_v5 = vld [vmem:[%s5085_s3 + $0x68] sm:$0xff] }
 0x194   : > { %1768 = vmatpush1.bf16.msra.mxu0 %v3586_v58  ;;  %1849 = vmatprep.subr.bf16.mxu1 %v3635_v6  ;;  %v1981_v58 = vld [vmem:[%s5085_s3 + $0x50] sm:$0xff]  ;;  %v3650_v6 = vld [vmem:[%s4426_s7 + $0x1c4] ss:$24 sps:$4 sm:$0xff]  }
 0x195   : > { %1769 = vmatprep.subr.bf16.mxu0 %v3594_v61  ;;  %v1999_v61 = vld [vmem:[%s5085_s3 + $0xe0] sm:$0xff]  ;;  %v3165_v0 = vpack.c.bf16 %v1982_v59, %v1981_v58  ;;  %v3711_v58 = vld [vmem:[%s4426_s7 + $0x5b0] ss:$24 sps:$4 sm:$0xff]  }
 0x196   : > { %v3716_v59 = vld [vmem:[%s4426_s7 + $0x5e4] ss:$24 sps:$4 sm:$0xff]  }
 0x197   : > { %1850 = vmatpush1.bf16.msra.mxu1 %v3633_v8  ;;  %v3648_v8 = vld [vmem:[%s4426_s7 + $0x1c0] ss:$24 sps:$4 sm:$0xff]  }
 0x198   : > { %1770 = vmatpush1.bf16.msra.mxu0 %v3592_v62  ;;  %1851 = vmatprep.subr.bf16.mxu1 %v3641_v10  ;;  %v2000_v62 = vld [vmem:[%s5085_s3 + $0xe8] sm:$0xff] }
 0x199   : > { %1862 = vmatprep.subr.bf16.mxu0 %v3602_v2  ;;  %v3167_v2 = vpack.c.bf16 %v2000_v62, %v1999_v61  ;;  %v3651_v10 = vld [vmem:[%s4426_s7 + $0x1f0] ss:$24 sps:$4 sm:$0xff]   ;;  %v2003_v61 = vld [vmem:[%s5085_s3 + $0x100] sm:$0xff] }
 0x19a   : > { %v2004_v62 = vld [vmem:[%s5085_s3 + $0x108] sm:$0xff] }
 0x19b   : > { %1772 = vmatmul.mubr.bf16.vlgmr.msra.gmra.mrb[0].mxu0 %v4601_v4  ;;  %1852 = vmatpush1.bf16.msra.mxu1 %v3639_v14  ;;  %v3657_v14 = vld [vmem:[%s4426_s7 + $0x250] ss:$24 sps:$4 sm:$0xff]  }
 0x19c   : > { %1863 = vmatpush1.bf16.msra.mxu0 %v3600_v3  ;;  %1894 = vmatprep.mubr.bf16.mxu0 %v4492_v35  ;;  %v1971_v35 = vld [vmem:[%s5085_s3] sm:$0xff] }
 0x19d   : > { %1864 = vmatprep.subr.bf16.mxu0 %v3608_v7  ;;  %v3145_v22 = vpack.c.bf16 %v1972_v18, %v1971_v35  ;;  %3144 = vmatprep.subr.bf16.mxu1 %v3143_v17  ;;  %v1983_v3 = vld [vmem:[%s5085_s3 + $0x60] sm:$0xff]  ;;  %v3665_v35 = vld [vmem:[%s4426_s7 + $0x2b4] ss:$24 sps:$4 sm:$0xff]   ;;  %v3663_v18 = vld [vmem:[%s4426_s7 + $0x2b0] ss:$24 sps:$4 sm:$0xff]  }
 0x19e   : > { %1854 = vmatmul.mubr.bf16.vlgmr.msra.gmra.mrb[0].mxu1 %v4601_v4  ;;  %v3169_v7 = vpack.c.bf16 %v1984_v5, %v1983_v3  ;;  %v3660_v17 = vld [vmem:[%s4426_s7 + $0x280] ss:$24 sps:$4 sm:$0xff]  }
 0x19f   : > { %3146 = vmatpush3.bf16.msra.mxu1 %v3145_v22  ;;  %v3669_v22 = vld [vmem:[%s4426_s7 + $0x310] ss:$24 sps:$4 sm:$0xff]  }
 0x1a0   : > { %1865 = vmatpush1.bf16.msra.mxu0 %v3606_v9  ;;  %3148 = vmatprep.subr.bf16.mxu1 %v3147_v24  ;;  %v3653_v9 = vld [vmem:[%s4426_s7 + $0x1f4] ss:$24 sps:$4 sm:$0xff]   ;;  %v3672_v24 = vld [vmem:[%s4426_s7 + $0x340] ss:$24 sps:$4 sm:$0xff]  }
 0x1a1   : > { %1866 = vmatprep.subr.bf16.mxu0 %v3614_v11  ;;  %v3656_v11 = vld [vmem:[%s4426_s7 + $0x224] ss:$24 sps:$4 sm:$0xff]  }
 0x1a3   : > { %3150 = vmatpush3.bf16.msra.mxu1 %v3149_v30  ;;  %v3681_v30 = vld [vmem:[%s4426_s7 + $0x3d0] ss:$24 sps:$4 sm:$0xff]  }
 0x1a4   : > { %1867 = vmatpush1.bf16.msra.mxu0 %v3612_v15  ;;  %3152 = vmatprep.subr.bf16.mxu1 %v3151_v32  ;;  %v3662_v15 = vld [vmem:[%s4426_s7 + $0x284] ss:$24 sps:$4 sm:$0xff]   ;;  %v3684_v32 = vld [vmem:[%s4426_s7 + $0x400] ss:$24 sps:$4 sm:$0xff]  }
 0x1a5   : > { %1868 = vmatprep.subr.bf16.mxu0 %v3620_v19  ;;  %v3668_v19 = vld [vmem:[%s4426_s7 + $0x2e4] ss:$24 sps:$4 sm:$0xff]  }
 0x1a7   : > { %3154 = vmatpush3.bf16.msra.mxu1 %v3153_v39  ;;  %v2019_v39 = vld [vmem:[%s5085_s3 + $0x180] sm:$0xff] }
 0x1a8   : > { %1869 = vmatpush1.bf16.msra.mxu0 %v3618_v23  ;;  %3156 = vmatprep.subr.bf16.mxu1 %v3155_v41  ;;  %v3674_v23 = vld [vmem:[%s4426_s7 + $0x344] ss:$24 sps:$4 sm:$0xff]   ;;  %v3687_v41 = vld [vmem:[%s4426_s7 + $0x430] ss:$24 sps:$4 sm:$0xff]  }
 0x1a9   : > { %1870 = vmatprep.subr.bf16.mxu0 %v3626_v27  ;;  %v3680_v27 = vld [vmem:[%s4426_s7 + $0x3a4] ss:$24 sps:$4 sm:$0xff]  }
 0x1ab   : > { %3158 = vmatpush3.bf16.msra.mxu1 %v3157_v47  ;;  %v3698_v47 = vld [vmem:[%s4426_s7 + $0x4c4] ss:$24 sps:$4 sm:$0xff]  }
 0x1ac   : > { %1871 = vmatpush1.bf16.msra.mxu0 %v3624_v31  ;;  %3160 = vmatprep.subr.bf16.mxu1 %v3159_v49  ;;  %v2002_v31 = vld [vmem:[%s5085_s3 + $0xf8] sm:$0xff]  ;;  %v3701_v49 = vld [vmem:[%s4426_s7 + $0x4f4] ss:$24 sps:$4 sm:$0xff]  }
 0x1ad   : > { %1872 = vmatprep.subr.bf16.mxu0 %v3632_v36  ;;  %v1986_v36 = vld [vmem:[%s5085_s3 + $0x78] sm:$0xff] }
 0x1ae   : > { %v3173_v38 = vpack.c.bf16 %v1986_v36, %v1985_v34  ;;  %v2030_v34 = vld [vmem:[%s5085_s3 + $0x1d8] sm:$0xff] }
 0x1af   : > { %3162 = vmatpush3.bf16.msra.mxu1 %v3161_v55  ;;  %v3710_v55 = vld [vmem:[%s4426_s7 + $0x584] ss:$24 sps:$4 sm:$0xff]  }
 0x1b0   : > { %1873 = vmatpush1.bf16.msra.mxu0 %v3630_v40  ;;  %3164 = vmatprep.subr.bf16.mxu1 %v3163_v57  ;;  %v2020_v40 = vld [vmem:[%s5085_s3 + $0x188] sm:$0xff] }
 0x1b1   : > { %1874 = vmatprep.subr.bf16.mxu0 %v3638_v44  ;;  %v3175_v42 = vpack.c.bf16 %v2020_v40, %v2019_v39  ;;  %v3690_v44 = vld [vmem:[%s4426_s7 + $0x460] ss:$24 sps:$4 sm:$0xff]   ;;  %v3713_v57 = vld [vmem:[%s4426_s7 + $0x5b4] ss:$24 sps:$4 sm:$0xff]  }
 0x1b2   : > { %v2014_v39 = vld [vmem:[%s5085_s3 + $0x158] sm:$0xff]  ;;  %v2031_v40 = vld [vmem:[%s5085_s3 + $0x1e0] sm:$0xff] }
 0x1b3   : > { %3166 = vmatpush3.bf16.msra.mxu1 %v3165_v0 }
 0x1b4   : > { %1875 = vmatpush1.bf16.msra.mxu0 %v3636_v48  ;;  %3168 = vmatprep.subr.bf16.mxu1 %v3167_v2  ;;  %v3696_v48 = vld [vmem:[%s4426_s7 + $0x4c0] ss:$24 sps:$4 sm:$0xff]  }
 0x1b5   : > { %1876 = vmatprep.subr.bf16.mxu0 %v3644_v52  ;;  %v3702_v52 = vld [vmem:[%s4426_s7 + $0x520] ss:$24 sps:$4 sm:$0xff]  }
 0x1b6   : > { %v2022_v2 = vld [vmem:[%s5085_s3 + $0x198] sm:$0xff] }
 0x1b7   : > { %3170 = vmatpush3.bf16.msra.mxu1 %v3169_v7 }
 0x1b8   : > { %1877 = vmatpush1.bf16.msra.mxu0 %v3642_v56  ;;  %v3708_v56 = vld [vmem:[%s4426_s7 + $0x580] ss:$24 sps:$4 sm:$0xff]  }
 0x1b9   : > { %1878 = vmatprep.subr.bf16.mxu0 %v3647_v60  ;;  %v3714_v60 = vld [vmem:[%s4426_s7 + $0x5e0] ss:$24 sps:$4 sm:$0xff]  }
 0x1bc   : > { %1879 = vmatpush1.bf16.msra.mxu0 %v3645_v1  ;;  %v2021_v1 = vld [vmem:[%s5085_s3 + $0x190] sm:$0xff] }
 0x1bd   : > { %1880 = vmatprep.subr.bf16.mxu0 %v3650_v6  ;;  %v3177_v6 = vpack.c.bf16 %v2004_v62, %v2003_v61 }
 0x1c0   : > { %1881 = vmatpush1.bf16.msra.mxu0 %v3648_v8 }
 0x1c1   : > { %1882 = vmatprep.subr.bf16.mxu0 %v3653_v9  ;;  %v3179_v9 = vpack.c.bf16 %v2022_v2, %v2021_v1  ;;  %v2038_v1 = vld [vmem:[%s5085_s3 + $0x218] sm:$0xff]  ;;  %v2055_v2 = vld [vmem:[%s5085_s3 + $0x2a0] sm:$0xff] }
 0x1c4   : > { %1883 = vmatpush1.bf16.msra.mxu0 %v3651_v10  ;;  %v2005_v10 = vld [vmem:[%s5085_s3 + $0x110] sm:$0xff] }
 0x1c5   : > { %1884 = vmatprep.subr.bf16.mxu0 %v3656_v11  ;;  %v2006_v11 = vld [vmem:[%s5085_s3 + $0x118] sm:$0xff] }
 0x1c8   : > { %1885 = vmatpush1.bf16.msra.mxu0 %v3654_v12  ;;  %v2023_v12 = vld [vmem:[%s5085_s3 + $0x1a0] sm:$0xff] }
 0x1c9   : > { %1886 = vmatprep.subr.bf16.mxu0 %v3659_v13  ;;  %v2024_v13 = vld [vmem:[%s5085_s3 + $0x1a8] sm:$0xff] }
 0x1cc   : > { %1887 = vmatpush1.bf16.msra.mxu0 %v3657_v14  ;;  %v3181_v14 = vpack.c.bf16 %v2006_v11, %v2005_v10 }
 0x1cd   : > { %1888 = vmatprep.subr.bf16.mxu0 %v3662_v15  ;;  %v3183_v15 = vpack.c.bf16 %v2024_v13, %v2023_v12  ;;  %v2041_v12 = vld [vmem:[%s5085_s3 + $0x230] sm:$0xff]  ;;  %v2042_v13 = vld [vmem:[%s5085_s3 + $0x238] sm:$0xff] }
 0x1d0   : > { %1889 = vmatpush1.bf16.msra.mxu0 %v3660_v17  ;;  %v2007_v17 = vld [vmem:[%s5085_s3 + $0x120] sm:$0xff] }
 0x1d1   : > { %1890 = vmatprep.subr.bf16.mxu0 %v3665_v35  ;;  %v2008_v35 = vld [vmem:[%s5085_s3 + $0x128] sm:$0xff] }
 0x1d4   : > { %1891 = vmatpush1.bf16.msra.mxu0 %v3663_v18  ;;  %v2025_v18 = vld [vmem:[%s5085_s3 + $0x1b0] sm:$0xff] }
 0x1d5   : > { %1892 = vmatprep.subr.bf16.mxu0 %v3668_v19  ;;  %v2026_v19 = vld [vmem:[%s5085_s3 + $0x1b8] sm:$0xff] }
 0x1d8   : > { %1893 = vmatpush1.bf16.msra.mxu0 %v3666_v20  ;;  %v3185_v20 = vpack.c.bf16 %v2008_v35, %v2007_v17  ;;  %v3221_v17 = vpack.c.bf16 %v2042_v13, %v2041_v12  ;;  %v2287_v12 = vld [vmem:[#allocation11 + $0x18] sm:$0xff] }
 0x1d9   : > { %1903 = vmatprep.subr.bf16.mxu0 %v3671_v21  ;;  %v3187_v21 = vpack.c.bf16 %v2026_v19, %v2025_v18  ;;  %v2043_v18 = vld [vmem:[%s5085_s3 + $0x240] sm:$0xff]  ;;  %v2044_v19 = vld [vmem:[%s5085_s3 + $0x248] sm:$0xff] }
 0x1db   : > { %1895 = vmatmul.mubr.bf16.vlgmr.msra.gmra.mrb[4].mxu0 %v4523_v63  ;;  %v3686_v63 = vld [vmem:[%s4426_s7 + $0x404] ss:$24 sps:$4 sm:$0xff]   ;;  %s5136_s7 = sld [smem:[#allocation34_spill]] }
 0x1dc   : > { %1904 = vmatpush1.bf16.msra.mxu0 %v3669_v22  ;;  %1935 = vmatprep.mubr.bf16.mxu0 %v4545_v16  ;;  %v2001_v16 = vld [vmem:[%s5085_s3 + $0xf0] sm:$0xff] }
 0x1dd   : > { %1905 = vmatprep.subr.bf16.mxu0 %v3674_v23  ;;  %v3171_v33 = vpack.c.bf16 %v2002_v31, %v2001_v16  ;;  %v2009_v22 = vld [vmem:[%s5085_s3 + $0x130] sm:$0xff]  ;;  %v2010_v23 = vld [vmem:[%s5085_s3 + $0x138] sm:$0xff]  ;;  %v2011_v31 = vld [vmem:[%s5085_s3 + $0x140] sm:$0xff] }
 0x1df   : > { %3172 = vmatprep.subr.bf16.mxu1 %v3171_v33  ;;  %v2029_v33 = vld [vmem:[%s5085_s3 + $0x1d0] sm:$0xff] }
 0x1e0   : > { %1906 = vmatpush1.bf16.msra.mxu0 %v3672_v24  ;;  %3174 = vmatpush3.bf16.msra.mxu1 %v3173_v38  ;;  %v2013_v38 = vld [vmem:[%s5085_s3 + $0x150] sm:$0xff] }
 0x1e1   : > { %1907 = vmatprep.subr.bf16.mxu0 %v3677_v25  ;;  %3176 = vmatprep.subr.bf16.mxu1 %v3175_v42  ;;  %v2027_v25 = vld [vmem:[%s5085_s3 + $0x1c0] sm:$0xff]  ;;  %v3197_v42 = vpack.c.bf16 %v2014_v39, %v2013_v38  ;;  %v4065_v38 = vmov 0.0|0.0  }
 0x1e2   : > { %v2289_v39 = vld [vmem:[%s5088_s6] sm:$0xff] }
 0x1e4   : > { %1908 = vmatpush1.bf16.msra.mxu0 %v3675_v26  ;;  %v2028_v26 = vld [vmem:[%s5085_s3 + $0x1c8] sm:$0xff] }
 0x1e5   : > { %1909 = vmatprep.subr.bf16.mxu0 %v3680_v27  ;;  %v3191_v16 = vpack.c.bf16 %v2028_v26, %v2027_v25  ;;  %v2046_v25 = vld [vmem:[%s5085_s3 + $0x258] sm:$0xff]  ;;  %v2063_v26 = vld [vmem:[%s5085_s3 + $0x2e0] sm:$0xff] }
 0x1e8   : > { %1910 = vmatpush1.bf16.msra.mxu0 %v3678_v28 }
 0x1e9   : > { %1911 = vmatprep.subr.bf16.mxu0 %v3683_v29 }
 0x1ec   : > { %1912 = vmatpush1.bf16.msra.mxu0 %v3681_v30  ;;  %v3189_v30 = vpack.c.bf16 %v2010_v23, %v2009_v22  ;;  %v3225_v22 = vpack.c.bf16 %v2044_v19, %v2043_v18 }
 0x1ed   : > { %1913 = vmatprep.subr.bf16.mxu0 %v3686_v63 }
 0x1f0   : > { %1914 = vmatpush1.bf16.msra.mxu0 %v3684_v32  ;;  %v2012_v32 = vld [vmem:[%s5085_s3 + $0x148] sm:$0xff] }
 0x1f1   : > { %1915 = vmatprep.subr.bf16.mxu0 %v3689_v37  ;;  %v3193_v36 = vpack.c.bf16 %v2012_v32, %v2011_v31  ;;  %v3195_v37 = vpack.c.bf16 %v2030_v34, %v2029_v33  ;;  %v2066_v31 = vld [vmem:[%s5085_s3 + $0x2f8] sm:$0xff]  ;;  %v2049_v34 = vld [vmem:[%s5085_s3 + $0x270] sm:$0xff] }
 0x1f4   : > { %1916 = vmatpush1.bf16.msra.mxu0 %v3687_v41  ;;  %v2032_v41 = vld [vmem:[%s5085_s3 + $0x1e8] sm:$0xff] }
 0x1f5   : > { %1917 = vmatprep.subr.bf16.mxu0 %v3692_v43  ;;  %v3199_v43 = vpack.c.bf16 %v2032_v41, %v2031_v40  ;;  %v2290_v40 = vld [vmem:[%s5088_s6 + $0x8] sm:$0xff] }
 0x1f8   : > { %1918 = vmatpush1.bf16.msra.mxu0 %v3690_v44  ;;  %v2015_v44 = vld [vmem:[%s5085_s3 + $0x160] sm:$0xff] }
 0x1f9   : > { %1919 = vmatprep.subr.bf16.mxu0 %v3695_v45  ;;  %v2016_v45 = vld [vmem:[%s5085_s3 + $0x168] sm:$0xff] }
 0x1fc   : > { %1920 = vmatpush1.bf16.msra.mxu0 %v3693_v46  ;;  %v2033_v46 = vld [vmem:[%s5085_s3 + $0x1f0] sm:$0xff] }
 0x1fd   : > { %1921 = vmatprep.subr.bf16.mxu0 %v3698_v47  ;;  %v2034_v47 = vld [vmem:[%s5085_s3 + $0x1f8] sm:$0xff] }
 0x200   : > { %1922 = vmatpush1.bf16.msra.mxu0 %v3696_v48  ;;  %v3201_v48 = vpack.c.bf16 %v2016_v45, %v2015_v44  ;;  %v2285_v44 = vld [vmem:[#allocation11 + $0x8] sm:$0xff] }
 0x201   : > { %1923 = vmatprep.subr.bf16.mxu0 %v3701_v49  ;;  %v3203_v49 = vpack.c.bf16 %v2034_v47, %v2033_v46  ;;  %v3240_v47 = vpack.c.bf16 %v2290_v40, %v2289_v39 }
 0x204   : > { %1924 = vmatpush1.bf16.msra.mxu0 %v3699_v50  ;;  %v2017_v50 = vld [vmem:[%s5085_s3 + $0x170] sm:$0xff] }
 0x205   : > { %1925 = vmatprep.subr.bf16.mxu0 %v3704_v51  ;;  %v2018_v51 = vld [vmem:[%s5085_s3 + $0x178] sm:$0xff] }
 0x208   : > { %1926 = vmatpush1.bf16.msra.mxu0 %v3702_v52  ;;  %v2051_v52 = vld [vmem:[%s5085_s3 + $0x280] sm:$0xff] }
 0x209   : > { %1927 = vmatprep.subr.bf16.mxu0 %v3707_v53  ;;  %v2052_v53 = vld [vmem:[%s5085_s3 + $0x288] sm:$0xff] }
 0x20c   : > { %1928 = vmatpush1.bf16.msra.mxu0 %v3705_v54  ;;  %v3205_v54 = vpack.c.bf16 %v2018_v51, %v2017_v50  ;;  %v2291_v51 = vld [vmem:[%s5088_s6 + $0x10] sm:$0xff] }
 0x20d   : > { %1929 = vmatprep.subr.bf16.mxu0 %v3710_v55  ;;  %v3207_v55 = vpack.c.bf16 %v2052_v53, %v2051_v52  ;;  %v2292_v52 = vld [vmem:[%s5088_s6 + $0x18] sm:$0xff] }
 0x20e   : > { %v3243_v53 = vpack.c.bf16 %v2292_v52, %v2291_v51 }
 0x210   : > { %1930 = vmatpush1.bf16.msra.mxu0 %v3708_v56  ;;  %v2035_v56 = vld [vmem:[%s5085_s3 + $0x200] sm:$0xff] }
 0x211   : > { %1931 = vmatprep.subr.bf16.mxu0 %v3713_v57  ;;  %v2036_v57 = vld [vmem:[%s5085_s3 + $0x208] sm:$0xff] }
 0x212   : > { %v3209_v61 = vpack.c.bf16 %v2036_v57, %v2035_v56  ;;  %v2295_v57 = vld [vmem:[%s5088_s6 + $0x30] sm:$0xff] }
 0x214   : > { %1932 = vmatpush1.bf16.msra.mxu0 %v3711_v58  ;;  %v2053_v58 = vld [vmem:[%s5085_s3 + $0x290] sm:$0xff] }
 0x215   : > { %1933 = vmatprep.subr.bf16.mxu0 %v3716_v59  ;;  %v2054_v59 = vld [vmem:[%s5085_s3 + $0x298] sm:$0xff] }
 0x216   : > { %v3211_v62 = vpack.c.bf16 %v2054_v59, %v2053_v58  ;;  %v2296_v58 = vld [vmem:[%s5088_s6 + $0x38] sm:$0xff] }
 0x217   : > { %v3249_v59 = vpack.c.bf16 %v2296_v58, %v2295_v57 }
 0x218   : > { %1934 = vmatpush1.bf16.msra.mxu0 %v3714_v60 }
 0x219   : > { %3263 = vmatprep.subr.bf16.mxu0 %v4065_v38 }
 0x21b   : > { %1936 = vmatmul.mubr.bf16.vlgmr.msra.gmra.mrb[4].mxu0 %v4601_v4 }
 0x26e   : > { %v1773_v0 = vpop.f32.mrb[0].mxu0 }
 0x26f   : > { %v1775_v3 = vpop.f32.mrb[1].mxu0  ;;  %v1965_v7 = vmul.f32 0.015625, %v1773_v0  ;;  %v2037_v0 = vld [vmem:[%s5085_s3 + $0x210] sm:$0xff] }
 0x270   : > { %v1966_v5 = vmul.f32 0.015625, %v1775_v3  ;;  %v1777_v4 = vpop.f32.mrb[2].mxu0  ;;  %v2056_v3 = vld [vmem:[%s5085_s3 + $0x2a8] sm:$0xff] }
 0x271   : > { %v1778_v8 = vpop.f32.mrb[3].mxu0  ;;  %v1855_v24 = vpop.f32.mrb[0].mxu1  ;;  %v3215_v4 = vpack.c.bf16 %v2056_v3, %v2055_v2  ;;  %v2301_v3 = vld [vmem:[%s5088_s6 + $0x60] sm:$0xff] }
 0x272   : > { %2138 = vmatprep.mubr.f32.mxu1 %v1966_v5  ;;  %v1857_v27 = vpop.f32.mrb[1].mxu1  ;;  %v1967_v60 = vmul.f32 0.015625, %v1855_v24  ;;  %v3213_v5 = vpack.c.bf16 %v2038_v1, %v2037_v0  ;;  %v2057_v8 = vld [vmem:[%s5085_s3 + $0x2b0] sm:$0xff]  ;;  %v2300_v1 = vld [vmem:[%s5088_s6 + $0x58] sm:$0xff] }
 0x273   : > { %2139 = vmatmul.mubr.f32.vlgmr.msra.gmra.mrb[4].mxu1 %v1965_v7  ;;  %v1968_v28 = vmul.f32 0.015625, %v1857_v27  ;;  %v1859_v29 = vpop.f32.mrb[2].mxu1  ;;  %v2040_v7 = vld [vmem:[%s5085_s3 + $0x228] sm:$0xff]  ;;  %v2045_v24 = vld [vmem:[%s5085_s3 + $0x250] sm:$0xff] }
 0x274   : > { %3178 = vmatpush3.bf16.msra.mxu1 %v3177_v6  ;;  %v1860_v63 = vpop.f32.mrb[3].mxu1  ;;  %v2039_v6 = vld [vmem:[%s5085_s3 + $0x220] sm:$0xff]  ;;  %v2064_v27 = vld [vmem:[%s5085_s3 + $0x2e8] sm:$0xff]  ;;  %v2299_v0 = vld [vmem:[%s5088_s6 + $0x50] sm:$0xff] }
 0x275   : > { %3180 = vmatprep.subr.bf16.mxu1 %v3179_v9  ;;  %2208 = vmatprep.mubr.f32.mxu1 %v1968_v28  ;;  %v2058_v9 = vld [vmem:[%s5085_s3 + $0x2b8] sm:$0xff]  ;;  %v3217_v10 = vpack.c.bf16 %v2040_v7, %v2039_v6  ;;  %v3229_v28 = vpack.c.bf16 %v2046_v25, %v2045_v24  ;;  %v3231_v29 = vpack.c.bf16 %v2064_v27, %v2063_v26  ;;  %v2048_v63 = vld [vmem:[%s5085_s3 + $0x268] sm:$0xff]  ;;  %v2303_v7 = vld [vmem:[%s5088_s6 + $0x70] sm:$0xff] }
 0x276   : > { %v3219_v11 = vpack.c.bf16 %v2058_v9, %v2057_v8  ;;  %v3255_v2 = vpack.c.bf16 %v2300_v1, %v2299_v0  ;;  %v2304_v8 = vld [vmem:[%s5088_s6 + $0x78] sm:$0xff]  ;;  %v2458_v27 = vld [vmem:[#allocation14] sm:$0xff] }
 0x278   : > { %3182 = vmatpush3.bf16.msra.mxu1 %v3181_v14  ;;  %v2059_v14 = vld [vmem:[%s5085_s3 + $0x2c0] sm:$0xff] }
 0x279   : > { %3184 = vmatprep.subr.bf16.mxu1 %v3183_v15  ;;  %v2060_v15 = vld [vmem:[%s5085_s3 + $0x2c8] sm:$0xff] }
 0x27a   : > { %v3223_v35 = vpack.c.bf16 %v2060_v15, %v2059_v14  ;;  %v2288_v15 = vld [vmem:[%s4436_s12] sm:$0xff]  ;;  %s5135_s12 = sld [smem:[#allocation25_spill]] }
 0x27c   : > { %3186 = vmatpush3.bf16.msra.mxu1 %v3185_v20  ;;  %v2061_v20 = vld [vmem:[%s5085_s3 + $0x2d0] sm:$0xff] }
 0x27d   : > { %3188 = vmatprep.subr.bf16.mxu1 %v3187_v21  ;;  %v2062_v21 = vld [vmem:[%s5085_s3 + $0x2d8] sm:$0xff] }
 0x27e   : > { %v3227_v23 = vpack.c.bf16 %v2062_v21, %v2061_v20 }
 0x280   : > { %3190 = vmatpush3.bf16.msra.mxu1 %v3189_v30  ;;  %v2047_v30 = vld [vmem:[%s5085_s3 + $0x260] sm:$0xff]  ;;  %s2951_s0 = sshll.u32 %s5135_s12, 7 }
 0x281   : > { %3192 = vmatprep.subr.bf16.mxu1 %v3191_v16  ;;  %v2065_v16 = vld [vmem:[%s5085_s3 + $0x2f0] sm:$0xff]  ;;  %v3233_v32 = vpack.c.bf16 %v2048_v63, %v2047_v30  ;;  %s5033_s21 = scalar_lea.hbm %s5136_s7, %s2951_s0 }
 0x282   : > { %v3235_v33 = vpack.c.bf16 %v2066_v31, %v2065_v16  ;;  %v2460_v16 = vld [vmem:[#allocation14 + $0x10] sm:$0xff]  ;;  %v2461_v31 = vld [vmem:[#allocation14 + $0x18] sm:$0xff] }
 0x284   : > { %3194 = vmatpush3.bf16.msra.mxu1 %v3193_v36  ;;  %v2050_v36 = vld [vmem:[%s5085_s3 + $0x278] sm:$0xff] }
 0x285   : > { %3196 = vmatprep.subr.bf16.mxu1 %v3195_v37  ;;  %v3237_v37 = vpack.c.bf16 %v2050_v36, %v2049_v34  ;;  %v2946_v34 = vld [vmem:[#allocation12] ss:$0 sm:$0xff] }
 0x288   : > { %3198 = vmatpush3.bf16.msra.mxu1 %v3197_v42  ;;  %v2284_v42 = vld [vmem:[#allocation11] sm:$0xff] }
 0x289   : > { %3200 = vmatprep.subr.bf16.mxu1 %v3199_v43 }
 0x28c   : > { %3202 = vmatpush3.bf16.msra.mxu1 %v3201_v48  ;;  %v3264_v48 = vpack.c.bf16 %v2285_v44, %v2284_v42 }
 0x28d   : > { %3204 = vmatprep.subr.bf16.mxu1 %v3203_v49 }
 0x28e   : > { %3265 = vmatpush3.bf16.msra.mxu0 %v3264_v48 }
 0x28f   : > { %3266 = vmatprep.subr.bf16.mxu0 %v4065_v38 }
 0x290   : > { %3206 = vmatpush3.bf16.msra.mxu1 %v3205_v54  ;;  %v2293_v54 = vld [vmem:[%s5088_s6 + $0x20] sm:$0xff] }
 0x291   : > { %3208 = vmatprep.subr.bf16.mxu1 %v3207_v55  ;;  %v2294_v55 = vld [vmem:[%s5088_s6 + $0x28] sm:$0xff] }
 0x292   : > { %v3246_v56 = vpack.c.bf16 %v2294_v55, %v2293_v54 }
 0x293   : > { %2209 = vmatmul.mubr.f32.vlgmr.msra.gmra.mrb[6].mxu1 %v1967_v60  ;;  %v2297_v60 = vld [vmem:[%s5088_s6 + $0x40] sm:$0xff] }
 0x294   : > { %3210 = vmatpush3.bf16.msra.mxu1 %v3209_v61  ;;  %v2298_v61 = vld [vmem:[%s5088_s6 + $0x48] sm:$0xff] }
 0x295   : > { %3212 = vmatprep.subr.bf16.mxu1 %v3211_v62  ;;  %v3252_v62 = vpack.c.bf16 %v2298_v61, %v2297_v60 }
 0x298   : > { %3214 = vmatpush3.bf16.msra.mxu1 %v3213_v5  ;;  %v2302_v5 = vld [vmem:[%s5088_s6 + $0x68] sm:$0xff] }
 0x299   : > { %3216 = vmatprep.subr.bf16.mxu1 %v3215_v4  ;;  %v3258_v4 = vpack.c.bf16 %v2302_v5, %v2301_v3 }
 0x29c   : > { %3218 = vmatpush3.bf16.msra.mxu1 %v3217_v10  ;;  %v3261_v10 = vpack.c.bf16 %v2304_v8, %v2303_v7 }
 0x29d   : > { %3220 = vmatprep.subr.bf16.mxu1 %v3219_v11  ;;  %v2286_v11 = vld [vmem:[#allocation11 + $0x10] sm:$0xff] }
 0x29e   : > { %v3267_v14 = vpack.c.bf16 %v2287_v12, %v2286_v11 }
 0x2a0   : > { %3222 = vmatpush3.bf16.msra.mxu1 %v3221_v17  ;;  %3268 = vmatpush3.bf16.msra.mxu0 %v3267_v14  ;;  %v4067_v17 = vmov 0.0  }
 0x2a1   : > { %3224 = vmatprep.subr.bf16.mxu1 %v3223_v35  ;;  %3129 = vmatprep.mubr.msk.f32.mxu0 %vm4066_vm0, %v4067_v17  ;;  %v2944_v35 = vld [vmem:[#allocation9] ss:$0 sm:$0xff] }
 0x2a4   : > { %3226 = vmatpush3.bf16.msra.mxu1 %v3225_v22 }
 0x2a5   : > { %3228 = vmatprep.subr.bf16.mxu1 %v3227_v23 }
 0x2a8   : > { %3230 = vmatpush3.bf16.msra.mxu1 %v3229_v28  ;;  %v2459_v28 = vld [vmem:[#allocation14 + $0x8] sm:$0xff] }
 0x2a9   : > { %3232 = vmatprep.subr.bf16.mxu1 %v3231_v29  ;;  %v3270_v29 = vpack.c.bf16 %v2459_v28, %v2458_v27 }
 0x2ac   : > { %3234 = vmatpush3.bf16.msra.mxu1 %v3233_v32  ;;  %v3273_v32 = vpack.c.bf16 %v2461_v31, %v2460_v16 }
 0x2ad   : > { %3236 = vmatprep.subr.bf16.mxu1 %v3235_v33 }
 0x2b0   : > { %3238 = vmatpush3.bf16.msra.mxu1 %v3237_v37 }
 0x2b1   : > { %3239 = vmatprep.subr.bf16.mxu1 %v4065_v38 }
 0x2ee   : > { %v1937_v41 = vpop.f32.mrb[4].mxu0 }
 0x2ef   : > { %v1939_v43 = vpop.f32.mrb[5].mxu0  ;;  %v1969_v49 = vmul.f32 0.015625, %v1937_v41  ;;  %v2947_v41 = vld [vmem:[#allocation15] ss:$0 sm:$0xff] }
 0x2f0   : > { %v1970_v45 = vmul.f32 0.015625, %v1939_v43  ;;  %v1941_v46 = vpop.f32.mrb[6].mxu0 }
 0x2f1   : > { %v1942_v50 = vpop.f32.mrb[7].mxu0 }
 0x2f2   : > { %2278 = vmatprep.mubr.f32.mxu1 %v1970_v45 }
 0x2f3   : > { %2279 = vmatmul.mubr.f32.vlgmr.msra.gmra.mrb[8].mxu1 %v1969_v49 }
 0x2f4   : > { %3241 = vmatpush3.bf16.msra.mxu1 %v3240_v47  ;;  %3118 = vmatprep.mubr.msk.f32.mxu1 %vm4066_vm0, %v4067_v17 }
 0x2f5   : > { %3242 = vmatprep.subr.bf16.mxu1 %v4065_v38 }
 0x2f8   : > { %3244 = vmatpush3.bf16.msra.mxu1 %v3243_v53 }
 0x2f9   : > { %3245 = vmatprep.subr.bf16.mxu1 %v4065_v38 }
 0x2fc   : > { %3247 = vmatpush3.bf16.msra.mxu1 %v3246_v56 }
 0x2fd   : > { %3248 = vmatprep.subr.bf16.mxu1 %v4065_v38 }
 0x300   : > { %3250 = vmatpush3.bf16.msra.mxu1 %v3249_v59 }
 0x301   : > { %3251 = vmatprep.subr.bf16.mxu1 %v4065_v38 }
 0x304   : > { %3253 = vmatpush3.bf16.msra.mxu1 %v3252_v62 }
 0x305   : > { %3254 = vmatprep.subr.bf16.mxu1 %v4065_v38 }
 0x308   : > { %3256 = vmatpush3.bf16.msra.mxu1 %v3255_v2 }
 0x309   : > { %3257 = vmatprep.subr.bf16.mxu1 %v4065_v38 }
 0x30c   : > { %3259 = vmatpush3.bf16.msra.mxu1 %v3258_v4 }
 0x30d   : > { %3260 = vmatprep.subr.bf16.mxu1 %v4065_v38 }
 0x310   : > { %3262 = vmatpush3.bf16.msra.mxu1 %v3261_v10 }
 0x311   : > { %3269 = vmatprep.subr.bf16.mxu1 %v4065_v38 }
 0x313   : > { %3119 = vmatmul.mubr.f32.vlgmr.msra.gmra.mrb[10].mxu1 %v2288_v15 }
 0x314   : > { %3140 = vmatprep.mubr.msk.f32.mxu1 %vm4066_vm0, %v4067_v17  ;;  %3271 = vmatpush3.bf16.msra.mxu1 %v3270_v29 }
 0x315   : > { %3272 = vmatprep.subr.bf16.mxu1 %v4065_v38 }
 0x318   : > { %3274 = vmatpush3.bf16.msra.mxu1 %v3273_v32 }
 0x346   : > { %v2986_v6 = vpop.f32.mrb[4].mxu1 }
 0x347   : > { %v2987_v9 = vpop.f32.mrb[5].mxu1 }
 0x348   : > { %v2988_v13 = vadd.f32 %v2987_v9, %v2986_v6 }
 0x34a   : > { %v2141_v20 = vadd.f32 %v2988_v13, %v2944_v35 }
 0x366   : > { %v3021_v18 = vpop.f32.mrb[6].mxu1 }
 0x367   : > { %v3022_v19 = vpop.f32.mrb[7].mxu1 }
 0x368   : > { %v3023_v21 = vadd.f32 %v3022_v19, %v3021_v18 }
 0x36a   : > { %v2211_v22 = vadd.f32 %v3023_v21, %v2141_v20 }
 0x3c6   : > { %v3056_v23 = vpop.f32.mrb[8].mxu1 }
 0x3c7   : > { %v3057_v24 = vpop.f32.mrb[9].mxu1 }
 0x3c8   : > { %v3058_v25 = vadd.f32 %v3057_v24, %v3056_v23 }
 0x3ca   : > { %v2281_v26 = vadd.f32 %v3058_v25, %v2211_v22 }
 0x3cc   : > { %3130 = vmatmul.mubr.msk.f32.vlgmr.msra.gmra.mrb[8].mxu0 %vm2375_vm1, %v2281_v26 }
 0x3e6   : > { %v2371_v30 = vpop.f32.mrb[10].mxu1 }
 0x3e7   : > { %v3120_v63 = vpop.f32.mrb[11].mxu1 }
 0x49f   : > { %v2445_v33 = vpop.f32.mrb[8].mxu0 }
 0x4a0   : > { %v2446_v36 = vadd.f32 %v2445_v33, %v2371_v30  ;;  %v3131_v37 = vpop.f32.mrb[9].mxu0 }
 0x4a2   : > { %v2456_v39 = vadd.f32 %v2946_v34, %v2446_v36 }
 0x4a4   : > { %v2457_v40 = vmax.f32 %v2456_v39, 0.0 }
 0x4a6   : > { %3141 = vmatmul.mubr.msk.f32.vlgmr.msra.gmra.mrb[12].mxu1 %vm2375_vm1, %v2457_v40 }
 0x579   : > { %v2538_v42 = vpop.f32.mrb[12].mxu1 }
 0x57a   : > { %v2539_v43 = vadd.f32 %v2947_v41, %v2538_v42  ;;  %v3142_v44 = vpop.f32.mrb[13].mxu1 }
 0x57c   : > { %v2949_v38 = vmul.f32 -1.442695, %v2539_v43 }
 0x57e   : > { %3717 = vpow2.f32 %v2949_v38 }
 0x588   : > { %v3718_v45 = vpop.eup %3717 }
 0x589   : > { %v2545_v46 = vadd.f32 1.0, %v3718_v45 }
 0x58b   : > { %3719 = vrcp.f32 %v2545_v46 }
 0x595   : > { %v3720_v47 = vpop.eup %3719 }
 0x596   : > { %2548 = vst [vmem:[%s511_s5] sm:$0xff] %v3720_v47 }
 0x597   : > { %3962 = shalt.err (!%p3959_p7)
}
 0x598   : > { %s3963_s2 = scalar_lea.hbm %s5033_s21, 128  ;;  %s3967_s27 = scalar_lea.hbm %s5136_s7, 256 }
 0x599   : > { %p3964_p2 = scmp.ne.s32.totalorder %s5033_s21, %s3963_s2  ;;  %p3968_p4 = scmp.lt.u32.totalorder %s5033_s21, %s5136_s7 }
 0x59a   : > { %p3969_p6 = scmp.lt.u32.totalorder %s3967_s27, %s3963_s2  ;;  %p3971_p12 = scmp.lt.u32.totalorder %s3963_s2, %s5033_s21 }
 0x59b   : > { %p3965_p8 = pnand %p3964_p2, %p5137_p0 }
 0x59c   : > { %p3970_p3 = por %p3969_p6, %p3968_p4 }
 0x59d   : > { %p3966_p9 = pneg %p3965_p8 }
 0x59e   : > { %p3972_p10 = por %p3971_p12, %p3970_p3 }
 0x5a0   : > { %p3973_p13 = pnand %p3972_p10, %p3966_p9 }
 0x5a2   : > { %3976 = shalt.err (!%p3973_p13)
}
 0x5a3   : > { %3318 = dma.vmem_to_hbm [thread:$0]  (%p5137_p0), %s5035_s11, 128, %s5033_s21, %s2550_s30  }
 0x5a4 PF: > { %s2575_s22 = sand.u32 1, %s4031_s13   ;;  %p5138_p1 = scmp.ne.s32.totalorder %s5122_s10, 0 }
 0x5a5   : > { %p5139_p11 = scmp.ge.s32.totalorder %s4051_s18, 2  ;;  %s2576_s12 = scalar_lea.sflag [#allocation5], %s2575_s22 }
 0x5a7   : > { %p3347_p5 = pnand %p5139_p11, %p5138_p1 }
 0x5a9   : > { %4026 = dma.done.wait (!%p3347_p5), %s2576_s12, 128  }
 0x5aa   : > { %4028 = vsyncadd (!%p3347_p5), %s2576_s12, 4294967168  ;;  %s32_s18 = sadd.s32 1, %s4051_s18   ;;  %s5140_s28 = sld [smem:[#allocation26_spill]] }
 0x5ab   : > { %p29_p7 = scmp.ge.s32.totalorder %s32_s18, 4   ;;  %s5141_s13 = smov %s4035_s14 }
 0x5ac   : > { %s5142_s14 = smov %s4039_s15  ;;  %s5143_s15 = smov %s4339_s24 }
 0x5ad   : > { %s5144_s16 = smov %s4047_s17  ;;  %31 = sbr.rel (!%p29_p7) target bundleno = 20 (0x14), region = 150 }
 0x5b0   : > { %s5145_s17 = smov %s5140_s28 }
 0x5b4   :  { %2581 = vsyncpa [#allocation4], 1 }
 0x5b5   :  { %2583 = vsyncpa [#allocation4 + $0x1], 1 }
 0x5b6   :  { %2584 = vsyncpa [#allocation7], 1 }
 0x5b7   :  { %2586 = vsyncpa [#allocation7 + $0x1], 1 }
 0x5b8   :  { %2587 = vsyncpa [#allocation10], 1 }
 0x5b9   :  { %2588 = vsyncpa [#allocation13], 1 }
 0x5ba   :  { %2589 = vsyncpa [#allocation16], 1 }
 0x5bb   :  { %2590 = vsyncpa [#allocation5], 1 }
 0x5bc   :  { %2592 = vsyncpa [#allocation5 + $0x1], 1 }

</bundles_post_ra>
